<compile_context>
chip_gen: v6e
topology: v6e:2x2x1
jax: 0.10.0
libtpu: 0.0.40
codegen_flags: <defaults>
</compile_context>

<pallas_src>
import functools

import jax
import jax.numpy as jnp
import numpy as np
from jax import lax
from jax.experimental import pallas as pl
from jax.experimental.pallas import tpu as pltpu

_PI = 3.14159265358979323846
_PI_2 = _PI / 2.0
_PI_4 = _PI / 4.0


def _round_up(x: int, m: int) -> int:
    return ((x + m - 1) // m) * m


# --------------------------- in-kernel math helpers ---------------------------
def _atan_pos(x):
    """arctan(x) for x >= 0 (f32): Cephes range reduction + poly, one EUP reciprocal."""
    big = x > 2.414213562373095      # tan(3*pi/8)
    mid = x > 0.4142135623730950     # tan(pi/8)
    # Fused range reduction: xr = num/den with a single approx reciprocal.
    num = jnp.where(big, -1.0, jnp.where(mid, x - 1.0, x))
    den = jnp.where(big, x, jnp.where(mid, x + 1.0, 1.0))   # den > 0 always
    xr = num * pl.reciprocal(den, approx=True)
    off = jnp.where(big, _PI_2, jnp.where(mid, _PI_4, 0.0))
    z = xr * xr
    p = (((8.05374449538e-2 * z - 1.38776856032e-1) * z
          + 1.99777106478e-1) * z - 3.33329491539e-1) * z * xr + xr
    return off + p


def _atan2(y, x):
    """Vectorized atan2(y, x) in (-pi, pi]; atan2(0, 0) = 0 (matches torch.angle(0))."""
    ax = jnp.abs(x)
    ay = jnp.abs(y)
    denom = jnp.where(ax == 0.0, 1.0, ax)
    base = _atan_pos(ay * pl.reciprocal(denom, approx=True))
    base = jnp.where(ax == 0.0, jnp.where(ay == 0.0, 0.0, _PI_2), base)
    ang = jnp.where(x < 0.0, _PI - base, base)
    return jnp.where(y < 0.0, -ang, ang)


# --------------------------------- kernel ------------------------------------
def _spectral_loss_kernel(pred_ref, targ_ref, basis_ref, out_ref, *, kcols):
    # pred/targ: (block_m, n_pad) bf16 frames; basis: (n_pad, 2*kcols) bf16 = [cos | -sin].
    # out: (1, 8, 128) f32 — per-tile partial SSEs at [0,0,0] (mag) and [0,0,1] (phase).
    p = pred_ref[...]
    t = targ_ref[...]
    basis = basis_ref[...]

    # One MXU matmul per input: re in columns [:kcols], im in columns [kcols:].
    p_spec = jnp.dot(p, basis, preferred_element_type=jnp.float32)
    t_spec = jnp.dot(t, basis, preferred_element_type=jnp.float32)
    p_re, p_im = p_spec[:, :kcols], p_spec[:, kcols:]
    t_re, t_im = t_spec[:, :kcols], t_spec[:, kcols:]

    # Magnitude MSE partial sum (f32).
    p_mag = jnp.sqrt(p_re * p_re + p_im * p_im)
    t_mag = jnp.sqrt(t_re * t_re + t_im * t_im)
    mag_d = p_mag - t_mag
    mag_sse = jnp.sum(mag_d * mag_d)

    # Phase MSE partial sum (f32).
    p_ph = _atan2(p_im, p_re)
    t_ph = _atan2(t_im, t_re)
    ph_d = p_ph - t_ph
    ph_sse = jnp.sum(ph_d * ph_d)

    # Lane-dense (8,128) output block; values read back at [0,0] and [0,1] only.
    lane = lax.broadcasted_iota(jnp.int32, (1, 8, 128), 2)
    out_ref[...] = jnp.where(lane == 0, mag_sse,
                             jnp.where(lane == 1, ph_sse, 0.0))


# ------------------------------ wrapper / glue --------------------------------
def _stft_frames(x_2d, n_fft: int, hop_length: int):
    """torch.stft(center=True, pad_mode='reflect', window=ones) framing.

    x_2d: (R, T) f32.  Returns ((R*F, n_fft) bf16 frames, F).  The bf16 cast is fused
    into the gather so the 4x-expanded frame tensor is only materialized once, in bf16.
    """
    pad = n_fft // 2
    xp = jnp.pad(x_2d, ((0, 0), (pad, pad)), mode="reflect")
    n_frames = 1 + (xp.shape[1] - n_fft) // hop_length
    starts = jnp.arange(n_frames) * hop_length
    idx = starts[:, None] + jnp.arange(n_fft)[None, :]          # (F, n_fft)
    frames = xp[:, idx].astype(jnp.bfloat16)                    # (R, F, n_fft) bf16
    return frames.reshape(-1, n_fft), n_frames


def _fused_dft_basis(n_fft: int, n_pad: int, kcols: int):
    """[cos | -sin] real-DFT basis for bins 0..kcols-1, zero-padded rows to n_pad."""
    n = np.arange(n_fft, dtype=np.float64)
    k = np.arange(kcols, dtype=np.float64)
    ang = 2.0 * np.pi * np.outer(n, k) / float(n_fft)
    nbins = min(kcols, n_fft // 2 + 1)                  # columns beyond K stay zero
    cos_m = np.zeros((n_pad, kcols), np.float32)
    msin_m = np.zeros((n_pad, kcols), np.float32)
    cos_m[:n_fft, :nbins] = np.cos(ang[:, :nbins])
    msin_m[:n_fft, :nbins] = -np.sin(ang[:, :nbins])
    msin_m[:, 0] = 0.0                                  # DC imag exactly zero
    if n_fft % 2 == 0 and (n_fft // 2) < nbins:
        msin_m[:, n_fft // 2] = 0.0                     # Nyquist imag exactly zero
    return jnp.asarray(np.concatenate([cos_m, msin_m], axis=1))   # (n_pad, 2*kcols) f32


def _vmem_cap_bytes() -> int:
    """~75% of physical VMEM (compiler scratch headroom), never above 100 MiB."""
    try:
        phys = int(pltpu.get_tpu_info().vmem_capacity_bytes)
    except Exception:
        phys = 64 * 1024 * 1024          # conservative (v7x-sized) fallback
    return int(min(100 * 1024 * 1024, (phys * 3) // 4))


def _step_vmem_bytes(block_m: int, n_pad: int, kcols: int) -> int:
    """Per-grid-step VMEM including f32 intermediates (double-buffered inputs)."""
    k2 = 2 * kcols
    frames = 2 * (2 * block_m * n_pad * 2)      # pred + targ bf16, double-buffered
    basis = 2 * (n_pad * k2 * 2)                # fused basis bf16, double-buffered
    out = 2 * (8 * 128 * 4)                     # output block, double-buffered
    matmul_out = 2 * block_m * k2 * 4           # f32 spectra for pred & targ
    elementwise = 3 * block_m * k2 * 4          # mag/phase/diff temporaries (headroom)
    return frames + basis + out + matmul_out + elementwise


def spectral_loss_pallas(pred, target, n_fft: int = 2048, hop_length: int = 512,
                         *, block_m: int = 256):
    """Pallas implementation of SpectralLoss.forward.  pred/target: (B, C, T)."""
    B, C, T = pred.shape
    R = B * C
    K = n_fft // 2 + 1

    fr_p, n_frames = _stft_frames(pred.reshape(R, T).astype(jnp.float32), n_fft, hop_length)
    fr_t, _ = _stft_frames(target.reshape(R, T).astype(jnp.float32), n_fft, hop_length)
    M = R * n_frames

    # Column geometry: handle the lone Nyquist bin outside the kernel whenever that
    # makes the kernel's bin count an exact multiple of 128 (no zero-padded columns).
    split_nyquist = (n_fft % 256 == 0)
    kcols = (n_fft // 2) if split_nyquist else _round_up(K, 128)
    n_pad = _round_up(n_fft, 128)

    # block_m: large enough to amortize per-step overhead, shrunk if the VMEM budget
    # (inputs + f32 intermediates) would exceed ~75% of physical VMEM.
    block_m = max(16, _round_up(int(block_m), 16))
    block_m = min(block_m, _round_up(M, 16))
    vmem_cap = _vmem_cap_bytes()
    while block_m > 64 and _step_vmem_bytes(block_m, n_pad, kcols) > vmem_cap:
        block_m = max(64, _round_up(block_m // 2, 16))
    m_pad = _round_up(M, block_m)
    grid_m = m_pad // block_m
    vmem_limit = int(min(vmem_cap,
                         max(16 * 1024 * 1024,
                             _step_vmem_bytes(block_m, n_pad, kcols) + 8 * 1024 * 1024)))

    # Nyquist bin handled in plain JAX (re = sum x[n]*(-1)^n, im = 0 exactly).
    nyq_mag_sse = jnp.float32(0.0)
    nyq_ph_sse = jnp.float32(0.0)
    if split_nyquist:
        alt = jnp.asarray(np.where(np.arange(n_fft) % 2 == 0, 1.0, -1.0)
                          .astype(np.float32), dtype=jnp.bfloat16)
        p_nyq = jnp.dot(fr_p, alt, preferred_element_type=jnp.float32)   # (M,)
        t_nyq = jnp.dot(fr_t, alt, preferred_element_type=jnp.float32)
        d_mag = jnp.abs(p_nyq) - jnp.abs(t_nyq)
        nyq_mag_sse = jnp.sum(d_mag * d_mag)
        p_ph = jnp.where(p_nyq < 0.0, jnp.float32(_PI), jnp.float32(0.0))
        t_ph = jnp.where(t_nyq < 0.0, jnp.float32(_PI), jnp.float32(0.0))
        d_ph = p_ph - t_ph
        nyq_ph_sse = jnp.sum(d_ph * d_ph)

    # Zero-pad frames only where needed (zero rows/cols contribute exactly 0 to the SSEs).
    pad_rows, pad_cols = m_pad - M, n_pad - n_fft
    if pad_rows or pad_cols:
        fr_p_k = jnp.pad(fr_p, ((0, pad_rows), (0, pad_cols)))
        fr_t_k = jnp.pad(fr_t, ((0, pad_rows), (0, pad_cols)))
    else:
        fr_p_k, fr_t_k = fr_p, fr_t

    basis_b = _fused_dft_basis(n_fft, n_pad, kcols).astype(jnp.bfloat16)

    cost = pl.CostEstimate(
        flops=int(8 * m_pad * n_pad * kcols),                  # 2 matmuls/tile of width 2*kcols
        transcendentals=int(8 * m_pad * kcols),                # sqrt + atan2 recips per bin
        bytes_accessed=int(2 * (2 * m_pad * n_pad) + 2 * (n_pad * 2 * kcols)
                           + 4 * grid_m * 8 * 128),
    )

    # NOTE: the resident basis could be single-buffered via pipeline_mode=pl.Buffered(1)
    # on chips where that shaves VMEM; budget above already fits double-buffering.
    partials = pl.pallas_call(
        functools.partial(_spectral_loss_kernel, kcols=kcols),
        out_shape=jax.ShapeDtypeStruct((grid_m, 8, 128), jnp.float32),
        grid=(grid_m,),
        in_specs=[
            pl.BlockSpec((block_m, n_pad), lambda i: (i, 0)),        # pred frames (streamed)
            pl.BlockSpec((block_m, n_pad), lambda i: (i, 0)),        # target frames (streamed)
            pl.BlockSpec((n_pad, 2 * kcols), lambda i: (0, 0)),      # fused [cos|-sin] basis
        ],
        out_specs=pl.BlockSpec((1, 8, 128), lambda i: (i, 0, 0)),
        compiler_params=pltpu.CompilerParams(
            dimension_semantics=("parallel",),
            vmem_limit_bytes=vmem_limit),
        cost_estimate=cost,
    )(fr_p_k, fr_t_k, basis_b)

    inv_count = 1.0 / float(M * K)                 # mean over true (unpadded) elements
    mag_loss = (jnp.sum(partials[:, 0, 0]) + nyq_mag_sse) * inv_count
    phase_loss = (jnp.sum(partials[:, 0, 1]) + nyq_ph_sse) * inv_count
    return mag_loss + 0.1 * phase_loss


# ----------------------------- pure-JAX reference -----------------------------
def spectral_loss_ref(pred, target, n_fft: int, hop_length: int):
    """Same bf16-stream / f32-accumulate numerics as the kernel, accurate atan2."""
    B, C, T = pred.shape
    R = B * C
    fp, _ = _stft_frames(pred.reshape(R, T).astype(jnp.float32), n_fft, hop_length)
    ft, _ = _stft_frames(target.reshape(R, T).astype(jnp.float32), n_fft, hop_length)
    K = n_fft // 2 + 1
    n = np.arange(n_fft, dtype=np.float64)
    k = np.arange(K, dtype=np.float64)
    ang = 2.0 * np.pi * np.outer(n, k) / float(n_fft)
    cosm = np.cos(ang).astype(np.float32)
    sinm = np.sin(ang).astype(np.float32)
    sinm[:, 0] = 0.0
    if n_fft % 2 == 0:
        sinm[:, n_fft // 2] = 0.0
    cb = jnp.asarray(cosm, dtype=jnp.bfloat16)
    sb = jnp.asarray(sinm, dtype=jnp.bfloat16)
    p_re = jnp.dot(fp, cb, preferred_element_type=jnp.float32)
    p_im = -jnp.dot(fp, sb, preferred_element_type=jnp.float32)
    t_re = jnp.dot(ft, cb, preferred_element_type=jnp.float32)
    t_im = -jnp.dot(ft, sb, preferred_element_type=jnp.float32)
    p_mag = jnp.sqrt(p_re * p_re + p_im * p_im)
    t_mag = jnp.sqrt(t_re * t_re + t_im * t_im)
    mag_loss = jnp.mean((p_mag - t_mag) ** 2)
    p_ph = jnp.arctan2(p_im, p_re)
    t_ph = jnp.arctan2(t_im, t_re)
    phase_loss = jnp.mean((p_ph - t_ph) ** 2)
    return mag_loss + 0.1 * phase_loss


if __name__ == "__main__":
    key = jax.random.PRNGKey(0)
    k_pred, k_targ = jax.random.split(key)

    # Small shapes consistent with the module: audio (B, C, T) + reduced STFT params.
    B, C, T = 2, 2, 1024
    N_FFT, HOP = 256, 64

    pred = jax.random.normal(k_pred, (B, C, T), dtype=jnp.float32)
    target = jax.random.normal(k_targ, (B, C, T), dtype=jnp.float32)

    out = spectral_loss_pallas(pred, target, n_fft=N_FFT, hop_length=HOP)
    out = jax.block_until_ready(out)

    ref = spectral_loss_ref(pred, target, N_FFT, HOP)
    ref = jax.block_until_ready(ref)

    np.testing.assert_allclose(np.asarray(out), np.asarray(ref), rtol=1e-3, atol=1e-3)
    print("KERNEL_OK")
</pallas_src>

<mosaic_0001>
module attributes {stable_mosaic.version = 11 : i64} {
  func.func @_spectral_loss_kernel(%arg0: i32, %arg1: memref<80x256xbf16, #tpu.memory_space<vmem>>, %arg2: memref<80x256xbf16, #tpu.memory_space<vmem>>, %arg3: memref<256x256xbf16, #tpu.memory_space<vmem>>, %arg4: memref<1x8x128xf32, #tpu.memory_space<vmem>>) attributes {dimension_semantics = [#tpu.dimension_semantics<parallel>], iteration_bounds = array<i64: 1>, scalar_prefetch = 0 : i64, scratch_operands = 0 : i64, tpu.core_type = #tpu.core_type<tc>, window_params = [{transform_indices = @transform_0, window_bounds = array<i64: 80, 256>}, {transform_indices = @transform_1, window_bounds = array<i64: 80, 256>}, {pipeline_mode = #tpu.pipeline_mode<synchronous>, transform_indices = @transform_2, window_bounds = array<i64: 256, 256>}, {transform_indices = @transform_3, window_bounds = array<i64: 1, 8, 128>}]} {
    %c0 = arith.constant 0 : index
    %c0_0 = arith.constant 0 : index
    %0 = vector.load %arg1[%c0, %c0_0] : memref<80x256xbf16, #tpu.memory_space<vmem>>, vector<80x256xbf16>
    %c0_1 = arith.constant 0 : index
    %c0_2 = arith.constant 0 : index
    %1 = vector.load %arg2[%c0_1, %c0_2] : memref<80x256xbf16, #tpu.memory_space<vmem>>, vector<80x256xbf16>
    %c0_3 = arith.constant 0 : index
    %c0_4 = arith.constant 0 : index
    %2 = vector.load %arg3[%c0_3, %c0_4] : memref<256x256xbf16, #tpu.memory_space<vmem>>, vector<256x256xbf16>
    %cst = arith.constant dense<0.000000e+00> : vector<80x256xf32>
    %3 = tpu.matmul %0, %2, %cst {dimension_numbers = #tpu.dot_dimension_numbers<[1], [0], [0], [1], [0, 0, 1, 1], [], []>} : vector<80x256xbf16>, vector<256x256xbf16>, vector<80x256xf32> -> vector<80x256xf32>
    %cst_5 = arith.constant dense<0.000000e+00> : vector<80x256xf32>
    %4 = tpu.matmul %1, %2, %cst_5 {dimension_numbers = #tpu.dot_dimension_numbers<[1], [0], [0], [1], [0, 0, 1, 1], [], []>} : vector<80x256xbf16>, vector<256x256xbf16>, vector<80x256xf32> -> vector<80x256xf32>
    %5 = vector.extract_strided_slice %3 {offsets = [0, 0], sizes = [80, 128], strides = [1, 1]} : vector<80x256xf32> to vector<80x128xf32>
    %6 = vector.extract_strided_slice %3 {offsets = [0, 128], sizes = [80, 128], strides = [1, 1]} : vector<80x256xf32> to vector<80x128xf32>
    %7 = vector.extract_strided_slice %4 {offsets = [0, 0], sizes = [80, 128], strides = [1, 1]} : vector<80x256xf32> to vector<80x128xf32>
    %8 = vector.extract_strided_slice %4 {offsets = [0, 128], sizes = [80, 128], strides = [1, 1]} : vector<80x256xf32> to vector<80x128xf32>
    %9 = arith.mulf %5, %5 : vector<80x128xf32>
    %10 = arith.mulf %6, %6 : vector<80x128xf32>
    %11 = arith.addf %9, %10 : vector<80x128xf32>
    %12 = math.sqrt %11 : vector<80x128xf32>
    %13 = arith.mulf %7, %7 : vector<80x128xf32>
    %14 = arith.mulf %8, %8 : vector<80x128xf32>
    %15 = arith.addf %13, %14 : vector<80x128xf32>
    %16 = math.sqrt %15 : vector<80x128xf32>
    %17 = arith.subf %12, %16 : vector<80x128xf32>
    %18 = arith.mulf %17, %17 : vector<80x128xf32>
    %19 = vector.shape_cast %18 : vector<80x128xf32> to vector<1x80x128xf32>
    %cst_6 = arith.constant dense<0.000000e+00> : vector<1xf32>
    %20 = vector.multi_reduction <add>, %19, %cst_6 [1, 2] : vector<1x80x128xf32> to vector<1xf32>
    %21 = vector.shape_cast %20 : vector<1xf32> to vector<1x1x1xf32>
    %22 = vector.extract %21[0, 0, 0] : f32 from vector<1x1x1xf32>
    %23 = math.absf %5 : vector<80x128xf32>
    %24 = math.absf %6 : vector<80x128xf32>
    %cst_7 = arith.constant 0.000000e+00 : f32
    %25 = vector.broadcast %cst_7 : f32 to vector<80x128xf32>
    %26 = arith.cmpf oeq, %23, %25 : vector<80x128xf32>
    %cst_8 = arith.constant 1.000000e+00 : f32
    %27 = vector.broadcast %cst_8 : f32 to vector<80x128xf32>
    %28 = arith.select %26, %27, %23 : vector<80x128xi1>, vector<80x128xf32>
    %29 = tpu.reciprocal %28 {approx = true} : vector<80x128xf32> -> vector<80x128xf32>
    %30 = arith.mulf %24, %29 : vector<80x128xf32>
    %cst_9 = arith.constant 2.41421366 : f32
    %31 = vector.broadcast %cst_9 : f32 to vector<80x128xf32>
    %32 = arith.cmpf ogt, %30, %31 : vector<80x128xf32>
    %cst_10 = arith.constant 0.414213568 : f32
    %33 = vector.broadcast %cst_10 : f32 to vector<80x128xf32>
    %34 = arith.cmpf ogt, %30, %33 : vector<80x128xf32>
    %cst_11 = arith.constant 1.000000e+00 : f32
    %35 = vector.broadcast %cst_11 : f32 to vector<80x128xf32>
    %36 = arith.subf %30, %35 : vector<80x128xf32>
    %37 = arith.select %34, %36, %30 : vector<80x128xi1>, vector<80x128xf32>
    %cst_12 = arith.constant -1.000000e+00 : f32
    %38 = vector.broadcast %cst_12 : f32 to vector<80x128xf32>
    %39 = arith.select %32, %38, %37 : vector<80x128xi1>, vector<80x128xf32>
    %cst_13 = arith.constant 1.000000e+00 : f32
    %40 = vector.broadcast %cst_13 : f32 to vector<80x128xf32>
    %41 = arith.addf %30, %40 : vector<80x128xf32>
    %cst_14 = arith.constant 1.000000e+00 : f32
    %42 = vector.broadcast %cst_14 : f32 to vector<80x128xf32>
    %43 = arith.select %34, %41, %42 : vector<80x128xi1>, vector<80x128xf32>
    %44 = arith.select %32, %30, %43 : vector<80x128xi1>, vector<80x128xf32>
    %45 = tpu.reciprocal %44 {approx = true} : vector<80x128xf32> -> vector<80x128xf32>
    %46 = arith.mulf %39, %45 : vector<80x128xf32>
    %cst_15 = arith.constant 0.785398185 : f32
    %cst_16 = arith.constant 0.000000e+00 : f32
    %47 = vector.broadcast %cst_15 : f32 to vector<80x128xf32>
    %48 = vector.broadcast %cst_16 : f32 to vector<80x128xf32>
    %49 = arith.select %34, %47, %48 : vector<80x128xi1>, vector<80x128xf32>
    %cst_17 = arith.constant 1.57079637 : f32
    %50 = vector.broadcast %cst_17 : f32 to vector<80x128xf32>
    %51 = arith.select %32, %50, %49 : vector<80x128xi1>, vector<80x128xf32>
    %52 = arith.mulf %46, %46 : vector<80x128xf32>
    %cst_18 = arith.constant 0.0805374458 : f32
    %53 = vector.broadcast %cst_18 : f32 to vector<80x128xf32>
    %54 = arith.mulf %53, %52 : vector<80x128xf32>
    %cst_19 = arith.constant 0.138776854 : f32
    %55 = vector.broadcast %cst_19 : f32 to vector<80x128xf32>
    %56 = arith.subf %54, %55 : vector<80x128xf32>
    %57 = arith.mulf %56, %52 : vector<80x128xf32>
    %cst_20 = arith.constant 0.199777111 : f32
    %58 = vector.broadcast %cst_20 : f32 to vector<80x128xf32>
    %59 = arith.addf %57, %58 : vector<80x128xf32>
    %60 = arith.mulf %59, %52 : vector<80x128xf32>
    %cst_21 = arith.constant 0.333329499 : f32
    %61 = vector.broadcast %cst_21 : f32 to vector<80x128xf32>
    %62 = arith.subf %60, %61 : vector<80x128xf32>
    %63 = arith.mulf %62, %52 : vector<80x128xf32>
    %64 = arith.mulf %63, %46 : vector<80x128xf32>
    %65 = arith.addf %64, %46 : vector<80x128xf32>
    %66 = arith.addf %51, %65 : vector<80x128xf32>
    %cst_22 = arith.constant 0.000000e+00 : f32
    %67 = vector.broadcast %cst_22 : f32 to vector<80x128xf32>
    %68 = arith.cmpf oeq, %23, %67 : vector<80x128xf32>
    %cst_23 = arith.constant 0.000000e+00 : f32
    %69 = vector.broadcast %cst_23 : f32 to vector<80x128xf32>
    %70 = arith.cmpf oeq, %24, %69 : vector<80x128xf32>
    %cst_24 = arith.constant 0.000000e+00 : f32
    %cst_25 = arith.constant 1.57079637 : f32
    %71 = vector.broadcast %cst_24 : f32 to vector<80x128xf32>
    %72 = vector.broadcast %cst_25 : f32 to vector<80x128xf32>
    %73 = arith.select %70, %71, %72 : vector<80x128xi1>, vector<80x128xf32>
    %74 = arith.select %68, %73, %66 : vector<80x128xi1>, vector<80x128xf32>
    %cst_26 = arith.constant 0.000000e+00 : f32
    %75 = vector.broadcast %cst_26 : f32 to vector<80x128xf32>
    %76 = arith.cmpf olt, %5, %75 : vector<80x128xf32>
    %cst_27 = arith.constant 3.14159274 : f32
    %77 = vector.broadcast %cst_27 : f32 to vector<80x128xf32>
    %78 = arith.subf %77, %74 : vector<80x128xf32>
    %79 = arith.select %76, %78, %74 : vector<80x128xi1>, vector<80x128xf32>
    %cst_28 = arith.constant 0.000000e+00 : f32
    %80 = vector.broadcast %cst_28 : f32 to vector<80x128xf32>
    %81 = arith.cmpf olt, %6, %80 : vector<80x128xf32>
    %cst_29 = arith.constant 0.000000e+00 : f32
    %82 = vector.broadcast %cst_29 : f32 to vector<80x128xf32>
    %83 = arith.subf %82, %79 : vector<80x128xf32>
    %84 = arith.select %81, %83, %79 : vector<80x128xi1>, vector<80x128xf32>
    %85 = math.absf %7 : vector<80x128xf32>
    %86 = math.absf %8 : vector<80x128xf32>
    %cst_30 = arith.constant 0.000000e+00 : f32
    %87 = vector.broadcast %cst_30 : f32 to vector<80x128xf32>
    %88 = arith.cmpf oeq, %85, %87 : vector<80x128xf32>
    %cst_31 = arith.constant 1.000000e+00 : f32
    %89 = vector.broadcast %cst_31 : f32 to vector<80x128xf32>
    %90 = arith.select %88, %89, %85 : vector<80x128xi1>, vector<80x128xf32>
    %91 = tpu.reciprocal %90 {approx = true} : vector<80x128xf32> -> vector<80x128xf32>
    %92 = arith.mulf %86, %91 : vector<80x128xf32>
    %cst_32 = arith.constant 2.41421366 : f32
    %93 = vector.broadcast %cst_32 : f32 to vector<80x128xf32>
    %94 = arith.cmpf ogt, %92, %93 : vector<80x128xf32>
    %cst_33 = arith.constant 0.414213568 : f32
    %95 = vector.broadcast %cst_33 : f32 to vector<80x128xf32>
    %96 = arith.cmpf ogt, %92, %95 : vector<80x128xf32>
    %cst_34 = arith.constant 1.000000e+00 : f32
    %97 = vector.broadcast %cst_34 : f32 to vector<80x128xf32>
    %98 = arith.subf %92, %97 : vector<80x128xf32>
    %99 = arith.select %96, %98, %92 : vector<80x128xi1>, vector<80x128xf32>
    %cst_35 = arith.constant -1.000000e+00 : f32
    %100 = vector.broadcast %cst_35 : f32 to vector<80x128xf32>
    %101 = arith.select %94, %100, %99 : vector<80x128xi1>, vector<80x128xf32>
    %cst_36 = arith.constant 1.000000e+00 : f32
    %102 = vector.broadcast %cst_36 : f32 to vector<80x128xf32>
    %103 = arith.addf %92, %102 : vector<80x128xf32>
    %cst_37 = arith.constant 1.000000e+00 : f32
    %104 = vector.broadcast %cst_37 : f32 to vector<80x128xf32>
    %105 = arith.select %96, %103, %104 : vector<80x128xi1>, vector<80x128xf32>
    %106 = arith.select %94, %92, %105 : vector<80x128xi1>, vector<80x128xf32>
    %107 = tpu.reciprocal %106 {approx = true} : vector<80x128xf32> -> vector<80x128xf32>
    %108 = arith.mulf %101, %107 : vector<80x128xf32>
    %cst_38 = arith.constant 0.785398185 : f32
    %cst_39 = arith.constant 0.000000e+00 : f32
    %109 = vector.broadcast %cst_38 : f32 to vector<80x128xf32>
    %110 = vector.broadcast %cst_39 : f32 to vector<80x128xf32>
    %111 = arith.select %96, %109, %110 : vector<80x128xi1>, vector<80x128xf32>
    %cst_40 = arith.constant 1.57079637 : f32
    %112 = vector.broadcast %cst_40 : f32 to vector<80x128xf32>
    %113 = arith.select %94, %112, %111 : vector<80x128xi1>, vector<80x128xf32>
    %114 = arith.mulf %108, %108 : vector<80x128xf32>
    %cst_41 = arith.constant 0.0805374458 : f32
    %115 = vector.broadcast %cst_41 : f32 to vector<80x128xf32>
    %116 = arith.mulf %115, %114 : vector<80x128xf32>
    %cst_42 = arith.constant 0.138776854 : f32
    %117 = vector.broadcast %cst_42 : f32 to vector<80x128xf32>
    %118 = arith.subf %116, %117 : vector<80x128xf32>
    %119 = arith.mulf %118, %114 : vector<80x128xf32>
    %cst_43 = arith.constant 0.199777111 : f32
    %120 = vector.broadcast %cst_43 : f32 to vector<80x128xf32>
    %121 = arith.addf %119, %120 : vector<80x128xf32>
    %122 = arith.mulf %121, %114 : vector<80x128xf32>
    %cst_44 = arith.constant 0.333329499 : f32
    %123 = vector.broadcast %cst_44 : f32 to vector<80x128xf32>
    %124 = arith.subf %122, %123 : vector<80x128xf32>
    %125 = arith.mulf %124, %114 : vector<80x128xf32>
    %126 = arith.mulf %125, %108 : vector<80x128xf32>
    %127 = arith.addf %126, %108 : vector<80x128xf32>
    %128 = arith.addf %113, %127 : vector<80x128xf32>
    %cst_45 = arith.constant 0.000000e+00 : f32
    %129 = vector.broadcast %cst_45 : f32 to vector<80x128xf32>
    %130 = arith.cmpf oeq, %85, %129 : vector<80x128xf32>
    %cst_46 = arith.constant 0.000000e+00 : f32
    %131 = vector.broadcast %cst_46 : f32 to vector<80x128xf32>
    %132 = arith.cmpf oeq, %86, %131 : vector<80x128xf32>
    %cst_47 = arith.constant 0.000000e+00 : f32
    %cst_48 = arith.constant 1.57079637 : f32
    %133 = vector.broadcast %cst_47 : f32 to vector<80x128xf32>
    %134 = vector.broadcast %cst_48 : f32 to vector<80x128xf32>
    %135 = arith.select %132, %133, %134 : vector<80x128xi1>, vector<80x128xf32>
    %136 = arith.select %130, %135, %128 : vector<80x128xi1>, vector<80x128xf32>
    %cst_49 = arith.constant 0.000000e+00 : f32
    %137 = vector.broadcast %cst_49 : f32 to vector<80x128xf32>
    %138 = arith.cmpf olt, %7, %137 : vector<80x128xf32>
    %cst_50 = arith.constant 3.14159274 : f32
    %139 = vector.broadcast %cst_50 : f32 to vector<80x128xf32>
    %140 = arith.subf %139, %136 : vector<80x128xf32>
    %141 = arith.select %138, %140, %136 : vector<80x128xi1>, vector<80x128xf32>
    %cst_51 = arith.constant 0.000000e+00 : f32
    %142 = vector.broadcast %cst_51 : f32 to vector<80x128xf32>
    %143 = arith.cmpf olt, %8, %142 : vector<80x128xf32>
    %cst_52 = arith.constant 0.000000e+00 : f32
    %144 = vector.broadcast %cst_52 : f32 to vector<80x128xf32>
    %145 = arith.subf %144, %141 : vector<80x128xf32>
    %146 = arith.select %143, %145, %141 : vector<80x128xi1>, vector<80x128xf32>
    %147 = arith.subf %84, %146 : vector<80x128xf32>
    %148 = arith.mulf %147, %147 : vector<80x128xf32>
    %149 = vector.shape_cast %148 : vector<80x128xf32> to vector<1x80x128xf32>
    %cst_53 = arith.constant dense<0.000000e+00> : vector<1xf32>
    %150 = vector.multi_reduction <add>, %149, %cst_53 [1, 2] : vector<1x80x128xf32> to vector<1xf32>
    %151 = vector.shape_cast %150 : vector<1xf32> to vector<1x1x1xf32>
    %152 = vector.extract %151[0, 0, 0] : f32 from vector<1x1x1xf32>
    %153 = tpu.iota {dimensions = array<i32: 2>} : vector<1x8x128xi32>
    %c0_i32 = arith.constant 0 : i32
    %154 = vector.broadcast %c0_i32 : i32 to vector<1x8x128xi32>
    %155 = arith.cmpi eq, %153, %154 : vector<1x8x128xi32>
    %c1_i32 = arith.constant 1 : i32
    %156 = vector.broadcast %c1_i32 : i32 to vector<1x8x128xi32>
    %157 = arith.cmpi eq, %153, %156 : vector<1x8x128xi32>
    %cst_54 = arith.constant 0.000000e+00 : f32
    %158 = vector.broadcast %152 : f32 to vector<1x8x128xf32>
    %159 = vector.broadcast %cst_54 : f32 to vector<1x8x128xf32>
    %160 = arith.select %157, %158, %159 : vector<1x8x128xi1>, vector<1x8x128xf32>
    %161 = vector.broadcast %22 : f32 to vector<1x8x128xf32>
    %162 = arith.select %155, %161, %160 : vector<1x8x128xi1>, vector<1x8x128xf32>
    %c0_55 = arith.constant 0 : index
    %c0_56 = arith.constant 0 : index
    %c0_57 = arith.constant 0 : index
    %163 = vector.load %arg4[%c0_55, %c0_56, %c0_57] : memref<1x8x128xf32, #tpu.memory_space<vmem>>, vector<1x8x128xf32>
    tpu.vector_store %arg4[%c0_55, %c0_56, %c0_57], %162 {strides = array<i32>} : memref<1x8x128xf32, #tpu.memory_space<vmem>>, vector<1x8x128xf32>,
    return
  }
  func.func @transform_0(%arg0: i32) -> (i32, i32) {
    %c0_i32 = arith.constant 0 : i32
    %c0_i32_0 = arith.constant 0 : i32
    return %arg0, %c0_i32 : i32, i32
  }
  func.func @transform_1(%arg0: i32) -> (i32, i32) {
    %c0_i32 = arith.constant 0 : i32
    %c0_i32_0 = arith.constant 0 : i32
    return %arg0, %c0_i32 : i32, i32
  }
  func.func @transform_2(%arg0: i32) -> (i32, i32) {
    %c0_i32 = arith.constant 0 : i32
    %c0_i32_0 = arith.constant 0 : i32
    %c0_i32_1 = arith.constant 0 : i32
    return %c0_i32, %c0_i32_0 : i32, i32
  }
  func.func @transform_3(%arg0: i32) -> (i32, i32, i32) {
    %c0_i32 = arith.constant 0 : i32
    %c0_i32_0 = arith.constant 0 : i32
    %c0_i32_1 = arith.constant 0 : i32
    return %arg0, %c0_i32, %c0_i32_0 : i32, i32, i32
  }
}

</mosaic_0001>

<bundles_post_ra>
// kernel: tpu_custom_call.1
= control target key start
LH: loop header
LB: loop body
LE: loop exit
PB: predicated region body
PF: predicated region fallthrough
CT: control target
= control target key end

     0   :  { %8 = vsyncpa [#allocation3], 0  ;;  %s3678_s0 = inlined_call_operand.hbm [shape: bf16[80,256], index: 0, kind: input, shape index: {}]   ;;  %s3679_s1 = inlined_call_operand.hbm [shape: bf16[80,256], index: 1, kind: input, shape index: {}]   ;;  %s3680_s2 = inlined_call_operand.hbm [shape: bf16[256,256], index: 2, kind: input, shape index: {}]   ;;  %s3681_s3 = inlined_call_operand.hbm [shape: f32[1,8,128], index: 3, kind: output, shape index: {}]  }
   0x1   :  { %9 = vsyncpa [#allocation6], 0 }
   0x2   :  { %10 = vsyncpa [#allocation4], 0  ;;  %s2003_s12 = smov [#allocation5]   ;;  %s2004_s14 = smov [#allocation2]  }
   0x3   :  { %s28_s13 = sshll.u32 %s2003_s12, 4  ;;  %s16_s15 = sshll.u32 %s2004_s14, 4  ;;  %s29_s13 = int_to_ptr.vmem [resolvable:$true] %s28_s13  ;;  %s17_s15 = int_to_ptr.vmem [resolvable:$true] %s16_s15 }
   0x4   :  { %s1925_s16 = scalar_lea.vmem %s29_s13, 1280  ;;  %p1930_p1 = scmp.lt.s32.totalorder %s29_s13, %s29_s13 }
   0x5   :  { %p1926_p0 = scmp.ne.s32.totalorder %s29_s13, %s1925_s16  ;;  %p1931_p2 = scmp.lt.s32.totalorder %s1925_s16, %s1925_s16 }
   0x7   :  { %p1932_p3 = por %p1931_p2, %p1930_p1 }
   0x9   :  { %p1933_p4 = pnand %p1932_p3, %p1926_p0 }
   0xb   :  { %1936 = shalt.err (!%p1933_p4)
}
   0xc   :  { %s2005_s17 = smov 128   ;;  %s2006_s18 = smov 8  }
   0xd   :  { %34 = dma.hbm_to_vmem [thread:$0]  %s3679_s1, 1280, %s29_s13, [#allocation6], %s2005_s17, %s2005_s17, %s2006_s18  }
   0xe   :  { %s1945_s21 = scalar_lea.vmem %s17_s15, 1280  ;;  %p1950_p6 = scmp.lt.s32.totalorder %s17_s15, %s17_s15 }
   0xf   :  { %p1946_p5 = scmp.ne.s32.totalorder %s17_s15, %s1945_s21  ;;  %p1951_p7 = scmp.lt.s32.totalorder %s1945_s21, %s1945_s21 }
  0x11   :  { %p1952_p8 = por %p1951_p7, %p1950_p6 }
  0x13   :  { %p1953_p9 = pnand %p1952_p8, %p1946_p5 }
  0x15   :  { %1956 = shalt.err (!%p1953_p9)
}
  0x16   :  { %22 = dma.hbm_to_vmem [thread:$0]  %s3678_s0, 1280, %s17_s15, [#allocation3], %s2005_s17, %s2005_s17, %s2006_s18  }
  0x17   :  { %s2007_s24 = smov [#allocation7]  }
  0x18   :  { %s40_s25 = sshll.u32 %s2007_s24, 4  ;;  %s41_s25 = int_to_ptr.vmem [resolvable:$true] %s40_s25 }
  0x19   :  { %s1965_s26 = scalar_lea.vmem %s41_s25, 4096  ;;  %p1970_p11 = scmp.lt.s32.totalorder %s41_s25, %s41_s25 }
  0x1a   :  { %p1966_p10 = scmp.ne.s32.totalorder %s41_s25, %s1965_s26  ;;  %p1971_p12 = scmp.lt.s32.totalorder %s1965_s26, %s1965_s26 }
  0x1c   :  { %p1972_p13 = por %p1971_p12, %p1970_p11 }
  0x1e   :  { %p1973_p0 = pnand %p1972_p13, %p1966_p10 }
  0x20   :  { %1976 = shalt.err (!%p1973_p0)
}
  0x21   :  { %46 = dma.hbm_to_vmem [thread:$0]  %s3680_s2, 4096, %s41_s25, [#allocation6], %s2005_s17, %s2005_s17, %s2006_s18  }
  0x22   :  { %1997 = dma.done.wait [#allocation3], 1280  }
  0x23   :  { %1998 = vsyncadd [#allocation3], 4294966016 }
  0x24   :  { %1999 = dma.done.wait [#allocation6], 5376  }
  0x25   :  { %2000 = vsyncadd [#allocation6], 4294961920  ;;  %v1719_v0 = vld [vmem:[#allocation7 + $0x74] ss:$8 sps:$4 sm:$0xff]   ;;  %v1721_v1 = vld [vmem:[#allocation7 + $0x70] ss:$8 sps:$4 sm:$0xff]  }
  0x26   :  { %318 = vmatprep.subr.bf16.mxu0 %v1719_v0  ;;  %451 = vmatprep.subr.bf16.mxu1 %v1719_v0  ;;  %v1722_v2 = vld [vmem:[#allocation7 + $0x64] ss:$8 sps:$4 sm:$0xff]   ;;  %v1724_v3 = vld [vmem:[#allocation7 + $0x60] ss:$8 sps:$4 sm:$0xff]   ;;  %v1725_v4 = vld [vmem:[#allocation7 + $0x54] ss:$8 sps:$4 sm:$0xff]  }
  0x27   :  { %319 = vmatpush1.bf16.msra.mxu0 %v1721_v1  ;;  %452 = vmatpush1.bf16.msra.mxu1 %v1721_v1  ;;  %v1727_v5 = vld [vmem:[#allocation7 + $0x50] ss:$8 sps:$4 sm:$0xff]   ;;  %v1728_v6 = vld [vmem:[#allocation7 + $0x44] ss:$8 sps:$4 sm:$0xff]   ;;  %v1730_v7 = vld [vmem:[#allocation7 + $0x40] ss:$8 sps:$4 sm:$0xff]  }
  0x28   :  { %320 = vmatprep.subr.bf16.mxu0 %v1722_v2  ;;  %453 = vmatprep.subr.bf16.mxu1 %v1722_v2  ;;  %v1731_v8 = vld [vmem:[#allocation7 + $0x34] ss:$8 sps:$4 sm:$0xff]   ;;  %v1733_v9 = vld [vmem:[#allocation7 + $0x30] ss:$8 sps:$4 sm:$0xff]   ;;  %v1734_v10 = vld [vmem:[#allocation7 + $0x24] ss:$8 sps:$4 sm:$0xff]  }
  0x29   :  { %v1736_v11 = vld [vmem:[#allocation7 + $0x20] ss:$8 sps:$4 sm:$0xff]   ;;  %v1737_v12 = vld [vmem:[#allocation7 + $0x14] ss:$8 sps:$4 sm:$0xff]   ;;  %v1769_v13 = vld [vmem:[#allocation2 + $0x4] ss:$8 sps:$4 sm:$0xff]  }
  0x2a   :  { %v1739_v14 = vld [vmem:[#allocation7 + $0x10] ss:$8 sps:$4 sm:$0xff]   ;;  %v1772_v15 = vld [vmem:[#allocation5 + $0x4] ss:$8 sps:$4 sm:$0xff]   ;;  %v1740_v16 = vld [vmem:[#allocation7 + $0x4] ss:$8 sps:$4 sm:$0xff]   ;;  %350 = vmatprep.mubr.bf16.mxu0 %v1769_v13 }
  0x2b   :  { %321 = vmatpush1.bf16.msra.mxu0 %v1724_v3  ;;  %454 = vmatpush1.bf16.msra.mxu1 %v1724_v3  ;;  %v1742_v17 = vld [vmem:[#allocation7] ss:$8 sps:$4 sm:$0xff]   ;;  %v1743_v18 = vld [vmem:[#allocation7 + $0xf4] ss:$8 sps:$4 sm:$0xff]   ;;  %v1745_v19 = vld [vmem:[#allocation7 + $0xf0] ss:$8 sps:$4 sm:$0xff]  }
  0x2c   :  { %322 = vmatprep.subr.bf16.mxu0 %v1725_v4  ;;  %455 = vmatprep.subr.bf16.mxu1 %v1725_v4  ;;  %v1746_v20 = vld [vmem:[#allocation7 + $0xe4] ss:$8 sps:$4 sm:$0xff]   ;;  %v1748_v21 = vld [vmem:[#allocation7 + $0xe0] ss:$8 sps:$4 sm:$0xff]   ;;  %v1749_v22 = vld [vmem:[#allocation7 + $0xd4] ss:$8 sps:$4 sm:$0xff]  }
  0x2d   :  { %483 = vmatprep.mubr.bf16.mxu1 %v1772_v15  ;;  %v1751_v23 = vld [vmem:[#allocation7 + $0xd0] ss:$8 sps:$4 sm:$0xff]   ;;  %v1752_v24 = vld [vmem:[#allocation7 + $0xc4] ss:$8 sps:$4 sm:$0xff]   ;;  %v1754_v25 = vld [vmem:[#allocation7 + $0xc0] ss:$8 sps:$4 sm:$0xff]  }
  0x2e   :  { %v1755_v26 = vld [vmem:[#allocation7 + $0xb4] ss:$8 sps:$4 sm:$0xff]   ;;  %v1757_v27 = vld [vmem:[#allocation7 + $0xb0] ss:$8 sps:$4 sm:$0xff]   ;;  %v1758_v28 = vld [vmem:[#allocation7 + $0xa4] ss:$8 sps:$4 sm:$0xff]  }
  0x2f   :  { %323 = vmatpush1.bf16.msra.mxu0 %v1727_v5  ;;  %456 = vmatpush1.bf16.msra.mxu1 %v1727_v5  ;;  %v1760_v29 = vld [vmem:[#allocation7 + $0xa0] ss:$8 sps:$4 sm:$0xff]   ;;  %v1761_v30 = vld [vmem:[#allocation7 + $0x94] ss:$8 sps:$4 sm:$0xff]   ;;  %v1763_v31 = vld [vmem:[#allocation7 + $0x90] ss:$8 sps:$4 sm:$0xff]  }
  0x30   :  { %324 = vmatprep.subr.bf16.mxu0 %v1728_v6  ;;  %457 = vmatprep.subr.bf16.mxu1 %v1728_v6  ;;  %v1764_v32 = vld [vmem:[#allocation7 + $0x84] ss:$8 sps:$4 sm:$0xff]   ;;  %v1766_v33 = vld [vmem:[#allocation7 + $0x80] ss:$8 sps:$4 sm:$0xff]   ;;  %v1770_v35 = vld [vmem:[#allocation5] ss:$8 sps:$4 sm:$0xff]  }
  0x31   :  { %v1767_v34 = vld [vmem:[#allocation2] ss:$8 sps:$4 sm:$0xff]   ;;  %v1773_v36 = vld [vmem:[#allocation2 + $0x14] ss:$8 sps:$4 sm:$0xff]   ;;  %v1775_v37 = vld [vmem:[#allocation5 + $0x14] ss:$8 sps:$4 sm:$0xff]  }
  0x32   :  { %v1777_v38 = vld [vmem:[#allocation2 + $0x10] ss:$8 sps:$4 sm:$0xff]   ;;  %v1778_v39 = vld [vmem:[#allocation5 + $0x10] ss:$8 sps:$4 sm:$0xff]   ;;  %v1779_v40 = vld [vmem:[#allocation2 + $0x24] ss:$8 sps:$4 sm:$0xff]  }
  0x33   :  { %325 = vmatpush1.bf16.msra.mxu0 %v1730_v7  ;;  %458 = vmatpush1.bf16.msra.mxu1 %v1730_v7  ;;  %v1781_v41 = vld [vmem:[#allocation5 + $0x24] ss:$8 sps:$4 sm:$0xff]   ;;  %v1783_v42 = vld [vmem:[#allocation2 + $0x20] ss:$8 sps:$4 sm:$0xff]   ;;  %v1784_v43 = vld [vmem:[#allocation5 + $0x20] ss:$8 sps:$4 sm:$0xff]  }
  0x34   :  { %326 = vmatprep.subr.bf16.mxu0 %v1731_v8  ;;  %459 = vmatprep.subr.bf16.mxu1 %v1731_v8  ;;  %v1785_v44 = vld [vmem:[#allocation2 + $0x34] ss:$8 sps:$4 sm:$0xff]   ;;  %v1787_v45 = vld [vmem:[#allocation5 + $0x34] ss:$8 sps:$4 sm:$0xff]   ;;  %v1789_v46 = vld [vmem:[#allocation2 + $0x30] ss:$8 sps:$4 sm:$0xff]  }
  0x35   :  { %v1790_v47 = vld [vmem:[#allocation5 + $0x30] ss:$8 sps:$4 sm:$0xff]   ;;  %v1791_v48 = vld [vmem:[#allocation2 + $0x44] ss:$8 sps:$4 sm:$0xff]   ;;  %v1793_v49 = vld [vmem:[#allocation5 + $0x44] ss:$8 sps:$4 sm:$0xff]  }
  0x36   :  { %v1795_v50 = vld [vmem:[#allocation2 + $0x40] ss:$8 sps:$4 sm:$0xff]   ;;  %v1796_v51 = vld [vmem:[#allocation5 + $0x40] ss:$8 sps:$4 sm:$0xff]   ;;  %s2010_s2 = smov [#allocation8]  }
  0x37   :  { %327 = vmatpush1.bf16.msra.mxu0 %v1733_v9  ;;  %460 = vmatpush1.bf16.msra.mxu1 %v1733_v9  ;;  %s1585_s28 = sshll.u32 %s2010_s2, 4  ;;  %s1586_s28 = int_to_ptr.vmem [resolvable:$true] %s1585_s28 }
  0x38   :  { %328 = vmatprep.subr.bf16.mxu0 %v1734_v10  ;;  %461 = vmatprep.subr.bf16.mxu1 %v1734_v10  ;;  %s1977_s30 = scalar_lea.vmem %s1586_s28, 128  ;;  %p1982_p2 = scmp.lt.s32.totalorder %s1586_s28, %s1586_s28 }
  0x39   :  { %p1978_p1 = scmp.ne.s32.totalorder %s1586_s28, %s1977_s30  ;;  %p1983_p3 = scmp.lt.s32.totalorder %s1977_s30, %s1977_s30 }
  0x3b   :  { %329 = vmatpush1.bf16.msra.mxu0 %v1736_v11  ;;  %462 = vmatpush1.bf16.msra.mxu1 %v1736_v11  ;;  %p1984_p4 = por %p1983_p3, %p1982_p2 }
  0x3c   :  { %330 = vmatprep.subr.bf16.mxu0 %v1737_v12  ;;  %463 = vmatprep.subr.bf16.mxu1 %v1737_v12 }
  0x3d   :  { %p1985_p5 = pnand %p1984_p4, %p1978_p1 }
  0x3f   :  { %331 = vmatpush1.bf16.msra.mxu0 %v1739_v14  ;;  %464 = vmatpush1.bf16.msra.mxu1 %v1739_v14 }
  0x40   :  { %332 = vmatprep.subr.bf16.mxu0 %v1740_v16  ;;  %465 = vmatprep.subr.bf16.mxu1 %v1740_v16 }
  0x43   :  { %333 = vmatpush1.bf16.msra.mxu0 %v1742_v17  ;;  %466 = vmatpush1.bf16.msra.mxu1 %v1742_v17 }
  0x44   :  { %334 = vmatprep.subr.bf16.mxu0 %v1743_v18  ;;  %467 = vmatprep.subr.bf16.mxu1 %v1743_v18 }
  0x47   :  { %335 = vmatpush2.bf16.msra.mxu0 %v1745_v19  ;;  %468 = vmatpush2.bf16.msra.mxu1 %v1745_v19 }
  0x48   :  { %336 = vmatprep.subr.bf16.mxu0 %v1746_v20  ;;  %469 = vmatprep.subr.bf16.mxu1 %v1746_v20 }
  0x4b   :  { %337 = vmatpush2.bf16.msra.mxu0 %v1748_v21  ;;  %470 = vmatpush2.bf16.msra.mxu1 %v1748_v21 }
  0x4c   :  { %338 = vmatprep.subr.bf16.mxu0 %v1749_v22  ;;  %471 = vmatprep.subr.bf16.mxu1 %v1749_v22 }
  0x4f   :  { %339 = vmatpush2.bf16.msra.mxu0 %v1751_v23  ;;  %472 = vmatpush2.bf16.msra.mxu1 %v1751_v23 }
  0x50   :  { %340 = vmatprep.subr.bf16.mxu0 %v1752_v24  ;;  %473 = vmatprep.subr.bf16.mxu1 %v1752_v24 }
  0x53   :  { %341 = vmatpush2.bf16.msra.mxu0 %v1754_v25  ;;  %474 = vmatpush2.bf16.msra.mxu1 %v1754_v25 }
  0x54   :  { %342 = vmatprep.subr.bf16.mxu0 %v1755_v26  ;;  %475 = vmatprep.subr.bf16.mxu1 %v1755_v26 }
  0x57   :  { %343 = vmatpush2.bf16.msra.mxu0 %v1757_v27  ;;  %476 = vmatpush2.bf16.msra.mxu1 %v1757_v27 }
  0x58   :  { %344 = vmatprep.subr.bf16.mxu0 %v1758_v28  ;;  %477 = vmatprep.subr.bf16.mxu1 %v1758_v28 }
  0x5b   :  { %345 = vmatpush2.bf16.msra.mxu0 %v1760_v29  ;;  %478 = vmatpush2.bf16.msra.mxu1 %v1760_v29 }
  0x5c   :  { %346 = vmatprep.subr.bf16.mxu0 %v1761_v30  ;;  %479 = vmatprep.subr.bf16.mxu1 %v1761_v30 }
  0x5f   :  { %347 = vmatpush2.bf16.msra.mxu0 %v1763_v31  ;;  %480 = vmatpush2.bf16.msra.mxu1 %v1763_v31 }
  0x60   :  { %348 = vmatprep.subr.bf16.mxu0 %v1764_v32  ;;  %481 = vmatprep.subr.bf16.mxu1 %v1764_v32 }
  0x63   :  { %349 = vmatpush2.bf16.msra.mxu0 %v1766_v33  ;;  %482 = vmatpush2.bf16.msra.mxu1 %v1766_v33 }
  0x66   :  { %351 = vmatmul.mubr.bf16.vlgmr.msra.gmra.mxu0 %v1767_v34  ;;  %484 = vmatmul.mubr.bf16.vlgmr.msra.gmra.mxu1 %v1770_v35 }
  0x67   :  { %360 = vmatprep.mubr.bf16.mxu0 %v1773_v36  ;;  %493 = vmatprep.mubr.bf16.mxu1 %v1775_v37 }
  0x6e   :  { %361 = vmatmul.mubr.bf16.gmra.mxu0 %v1777_v38  ;;  %494 = vmatmul.mubr.bf16.gmra.mxu1 %v1778_v39  ;;  %v3687_v39 = vmov 1.5707964  }
  0x6f   :  { %370 = vmatprep.mubr.bf16.mxu0 %v1779_v40  ;;  %503 = vmatprep.mubr.bf16.mxu1 %v1781_v41 }
  0x76   :  { %371 = vmatmul.mubr.bf16.gmra.mxu0 %v1783_v42  ;;  %504 = vmatmul.mubr.bf16.gmra.mxu1 %v1784_v43 }
  0x77   :  { %380 = vmatprep.mubr.bf16.mxu0 %v1785_v44  ;;  %513 = vmatprep.mubr.bf16.mxu1 %v1787_v45 }
  0x7e   :  { %381 = vmatmul.mubr.bf16.gmra.mxu0 %v1789_v46  ;;  %514 = vmatmul.mubr.bf16.gmra.mxu1 %v1790_v47 }
  0x7f   :  { %390 = vmatprep.mubr.bf16.mxu0 %v1791_v48  ;;  %523 = vmatprep.mubr.bf16.mxu1 %v1793_v49 }
  0x86   :  { %391 = vmatmul.mubr.bf16.gmra.mxu0 %v1795_v50  ;;  %524 = vmatmul.mubr.bf16.gmra.mxu1 %v1796_v51 }
 0x126   :  { %v2040_v52 = vpop.f32.mrf.mxu0  ;;  %v2042_v53 = vpop.f32.mrf.mxu1 }
 0x127   :  { %v772_v54 = vand.u32 2147483647, %v2040_v52  ;;  %v1152_v55 = vand.u32 2147483647, %v2042_v53  ;;  %v534_v22 = vmul.f32 %v2040_v52, %v2040_v52  ;;  %v634_v35 = vmul.f32 %v2042_v53, %v2042_v53 }
 0x128   :  { %v2046_v56 = vpop.f32.mrf.mxu0  ;;  %v2048_v57 = vpop.f32.mrf.mxu1 }
 0x129   :  { %vm2050_vm0 = vcmp.eq.f32.partialorder %v772_v54, 0.0  ;;  %vm2056_vm1 = vcmp.eq.f32.partialorder %v1152_v55, 0.0  ;;  %v782_v11 = vand.u32 2147483647, %v2046_v56  ;;  %v1162_v14 = vand.u32 2147483647, %v2048_v57 }
 0x12a   :  { %v802_v59 = vsel %vm2050_vm0, 1.0, %v772_v54  ;;  %v1182_v61 = vsel %vm2056_vm1, 1.0, %v1152_v55  ;;  %v2062_v62 = vpop.f32.mrf.mxu0  ;;  %v2064_v63 = vpop.f32.mrf.mxu1  ;;  %v544_v20 = vmul.f32 %v2046_v56, %v2046_v56  ;;  %v644_v25 = vmul.f32 %v2048_v57, %v2048_v57 }
 0x12b   :  { %1797 = vrcp.f32 %v802_v59  ;;  %v773_v0 = vand.u32 2147483647, %v2062_v62  ;;  %v1153_v2 = vand.u32 2147483647, %v2064_v63  ;;  %vm1062_vm9 = vcmp.eq.f32.partialorder %v782_v11, 0.0 }
 0x12c   :  { %1799 = vrcp.f32 %v1182_v61  ;;  %v2067_v1 = vpop.f32.mrf.mxu0  ;;  %v2070_v3 = vpop.f32.mrf.mxu1  ;;  %v2117_v26 = vadd.f32 %v544_v20, %v534_v22  ;;  %v2141_v40 = vsel %vm1062_vm9, 0.0, %v3687_v39  ;;  %v2143_v41 = vadd.f32 %v644_v25, %v634_v35 }
 0x12d   :  { %vm2072_vm2 = vcmp.eq.f32.partialorder %v773_v0, 0.0  ;;  %vm2078_vm3 = vcmp.eq.f32.partialorder %v1153_v2, 0.0  ;;  %v783_v30 = vand.u32 2147483647, %v2067_v1  ;;  %v1163_v33 = vand.u32 2147483647, %v2070_v3 }
 0x12e   :  { %v803_v5 = vsel %vm2072_vm2, 1.0, %v773_v0  ;;  %v1183_v7 = vsel %vm2078_vm3, 1.0, %v1153_v2  ;;  %v2084_v8 = vpop.f32.mrf.mxu0  ;;  %v2086_v9 = vpop.f32.mrf.mxu1  ;;  %3754 = vst [vmem:[#allocation13_spill] sm:$0xff] %v2143_v41  ;;  %v545_v42 = vmul.f32 %v2067_v1, %v2067_v1  ;;  %vm2151_vm12 = vcmp.eq.f32.partialorder %v1162_v14, 0.0 }
 0x12f   :  { %1801 = vrcp.f32 %v803_v5  ;;  %3749 = vst [vmem:[#allocation12_spill] sm:$0xff] %v2086_v9  ;;  %v774_v10 = vand.u32 2147483647, %v2084_v8  ;;  %v1154_v12 = vand.u32 2147483647, %v2086_v9  ;;  %v535_v45 = vmul.f32 %v2062_v62, %v2062_v62 }
 0x130   :  { %1803 = vrcp.f32 %v1183_v7  ;;  %v2148_v43 = vpop.f32.mrf.mxu0  ;;  %v635_v48 = vmul.f32 %v2064_v63, %v2064_v63  ;;  %v645_v49 = vmul.f32 %v2070_v3, %v2070_v3  ;;  %vm1063_vm15 = vcmp.eq.f32.partialorder %v783_v30, 0.0  ;;  %v2182_v7 = vpop.f32.mrf.mxu1 }
 0x131   :  { %vm2092_vm4 = vcmp.eq.f32.partialorder %v774_v10, 0.0  ;;  %vm2100_vm5 = vcmp.eq.f32.partialorder %v1154_v12, 0.0  ;;  %v3689_v54 = vand.u32 2147483647, %v2148_v43  ;;  %v2170_v61 = vadd.f32 %v545_v42, %v535_v45 }
 0x132   :  { %v804_v18 = vsel %vm2092_vm4, 1.0, %v774_v10  ;;  %v1184_v24 = vsel %vm2100_vm5, 1.0, %v1154_v12  ;;  %v2184_v10 = vpop.f32.mrf.mxu0  ;;  %v2193_v12 = vsel %vm2151_vm12, 0.0, %v3687_v39  ;;  %v3686_v22 = vand.u32 2147483647, %v2182_v7 }
 0x133   :  { %1805 = vrcp.f32 %v804_v18  ;;  %3757 = vst [vmem:[#allocation14_spill] sm:$0xff] %v2184_v10 }
 0x134   :  { %1807 = vrcp.f32 %v1184_v24 }
 0x136   :  { %v3798_v19 = vld [vmem:[#allocation12_spill] sm:$0xff] }
 0x138   :  { %v1798_v13 = vpop.eup %1797 }
 0x139   :  { %v1800_v16 = vpop.eup %1799  ;;  %v2096_v17 = vmul.f32 %v1798_v13, %v782_v11 }
 0x13a   :  { %v2106_v21 = vmul.f32 %v1800_v16, %v1162_v14  ;;  %v2199_v14 = vsel %vm1063_vm15, 0.0, %v3687_v39  ;;  %v2201_v16 = vadd.f32 %v645_v49, %v635_v48 }
 0x13b   :  { %vm842_vm6 = vcmp.gt.f32.partialorder %v2096_v17, 0.41421357  ;;  %v882_v23 = vadd.f32 1.0, %v2096_v17  ;;  %vm832_vm8 = vcmp.gt.f32.partialorder %v2096_v17, 2.4142137  ;;  %v1647_v47 = vadd.f32 -1.0, %v2096_v17 }
 0x13c   :  { %vm1222_vm7 = vcmp.gt.f32.partialorder %v2106_v21, 0.41421357  ;;  %v1262_v28 = vadd.f32 1.0, %v2106_v21  ;;  %v1802_v31 = vpop.eup %1801  ;;  %vm1212_vm10 = vcmp.gt.f32.partialorder %v2106_v21, 2.4142137  ;;  %v1677_v59 = vadd.f32 -1.0, %v2106_v21 }
 0x13d   :  { %v892_v27 = vsel %vm842_vm6, %v882_v23, 1.0  ;;  %v1804_v34 = vpop.eup %1803  ;;  %v2136_v37 = vmul.f32 %v1802_v31, %v783_v30  ;;  %v862_v11 = vsel %vm842_vm6, %v1647_v47, %v2096_v17  ;;  %3758 = vst [vmem:[#allocation15_spill] sm:$0xff] %v2201_v16  ;;  %v775_v23 = vand.u32 2147483647, %v2184_v10 }
 0x13e   :  { %v902_v29 = vsel %vm832_vm8, %v2096_v17, %v892_v27  ;;  %v1272_v32 = vsel %vm1222_vm7, %v1262_v28, 1.0  ;;  %v2138_v38 = vmul.f32 %v1804_v34, %v1163_v33  ;;  %v872_v25 = vsel %vm832_vm8, -1.0, %v862_v11 }
 0x13f   :  { %1809 = vrcp.f32 %v902_v29  ;;  %v1282_v36 = vsel %vm1212_vm10, %v2106_v21, %v1272_v32  ;;  %vm843_vm11 = vcmp.gt.f32.partialorder %v2136_v37, 0.41421357  ;;  %v883_v46 = vadd.f32 1.0, %v2136_v37 }
 0x140   :  { %1811 = vrcp.f32 %v1282_v36  ;;  %vm3683_vm13 = vcmp.gt.f32.partialorder %v2138_v38, 0.41421357  ;;  %vm3682_vm14 = vcmp.gt.f32.partialorder %v2136_v37, 2.4142137  ;;  %v1263_v51 = vadd.f32 1.0, %v2138_v38  ;;  %v1806_v55 = vpop.eup %1805  ;;  %v2237_v36 = vpop.f32.mrf.mxu1 }
 0x141   :  { %1813 = vrsqrt.f32 %v2117_v26  ;;  %v893_v50 = vsel %vm843_vm11, %v883_v46, 1.0  ;;  %vm1213_vm9 = vcmp.gt.f32.partialorder %v2138_v38, 2.4142137  ;;  %v2180_v5 = vmul.f32 %v1806_v55, %v3689_v54  ;;  %v1808_v24 = vpop.eup %1807  ;;  %3764 = vst [vmem:[#allocation17_spill] sm:$0xff] %v2237_v36 }
 0x142   :  { %v903_v0 = vsel %vm3682_vm14, %v2136_v37, %v893_v50  ;;  %v1273_v2 = vsel %vm3683_vm13, %v1263_v51, 1.0  ;;  %vm2204_vm13 = vcmp.eq.f32.partialorder %v1163_v33, 0.0  ;;  %v1242_v27 = vsel %vm1222_vm7, %v1677_v59, %v2106_v21 }
 0x143   :  { %1815 = vrcp.f32 %v903_v0  ;;  %v1283_v13 = vsel %vm1213_vm9, %v2138_v38, %v1273_v2  ;;  %vm3684_vm14 = vcmp.gt.f32.partialorder %v2180_v5, 0.41421357  ;;  %v884_v20 = vadd.f32 1.0, %v2180_v5 }
 0x144   :  { %1817 = vrsqrt.f32 %v2143_v41  ;;  %v1648_v28 = vadd.f32 -1.0, %v2136_v37  ;;  %vm3707_vm12 = vcmp.gt.f32.partialorder %v2180_v5, 2.4142137  ;;  %v2223_v31 = vmul.f32 %v1808_v24, %v3686_v22 }
 0x145   :  { %1819 = vrcp.f32 %v1283_v13  ;;  %v894_v30 = vsel %vm3684_vm14, %v884_v20, 1.0  ;;  %vm2225_vm15 = vcmp.eq.f32.partialorder %v775_v23, 0.0  ;;  %v3761_v32 = vmov 0 }
 0x146   :  { %1821 = vrsqrt.f32 %v2170_v61  ;;  %v3762_v32 = vsel %vm2225_vm15, 4294967295, %v3761_v32  ;;  %v904_v34 = vsel %vm3707_vm12, %v2180_v5, %v894_v30  ;;  %v805_v35 = vsel %vm2225_vm15, 1.0, %v775_v23 }
 0x147   :  { %3763 = vst [vmem:[#allocation16_spill] sm:$0xff] %v3762_v32  ;;  %1823 = vrsqrt.f32 %v2201_v16  ;;  %v1252_v44 = vsel %vm1212_vm10, -1.0, %v1242_v27  ;;  %v2244_v45 = vsel %vm2204_vm13, 0.0, %v3687_v39  ;;  %vm3685_vm14 = vcmp.gt.f32.partialorder %v2223_v31, 0.41421357 }
 0x148   :  { %1825 = vrcp.f32 %v904_v34  ;;  %v1678_v48 = vadd.f32 -1.0, %v2138_v38  ;;  %v1264_v49 = vadd.f32 1.0, %v2223_v31  ;;  %v863_v51 = vsel %vm843_vm11, %v1648_v28, %v2136_v37 }
 0x149   :  { %v2262_v55 = vmul.f32 %v2084_v8, %v2084_v8  ;;  %1827 = vrcp.f32 %v805_v35  ;;  %v1155_v59 = vand.u32 2147483647, %v2237_v36  ;;  %vm3706_vm13 = vcmp.gt.f32.partialorder %v2223_v31, 2.4142137 }
 0x14a   :  { %v1274_v11 = vsel %vm3685_vm14, %v1264_v49, 1.0  ;;  %v3690_v13 = vmov 0.0   ;;  %v2278_v20 = vmul.f32 %v2086_v9, %v2086_v9  ;;  %v1649_v23 = vadd.f32 -1.0, %v2180_v5 }
 0x14b   :  { %v932_v18 = vsel %vm842_vm6, 0.7853982, %v3690_v13  ;;  %v1284_v24 = vsel %vm3706_vm13, %v2223_v31, %v1274_v11  ;;  %vm3766_vm14 = vcmp.gt.f32.partialorder %v2138_v38, 0.41421357  ;;  %v1312_v34 = vsel %vm1222_vm7, 0.7853982, %v3690_v13 }
 0x14c   :  { %v1810_v29 = vpop.eup %1809  ;;  %v1243_v28 = vsel %vm3766_vm14, %v1678_v48, %v2138_v38  ;;  %1829 = vrcp.f32 %v1284_v24  ;;  %vm3768_vm6 = vcmp.gt.f32.partialorder %v2136_v37, 2.4142137  ;;  %vm2305_vm14 = vcmp.eq.f32.partialorder %v1155_v59, 0.0 }
 0x14d   :  { %v2229_v33 = vmul.f32 %v1810_v29, %v872_v25  ;;  %v1812_v42 = vpop.eup %1811  ;;  %v2288_v29 = vpop.f32.mrf.mxu0  ;;  %v873_v35 = vsel %vm3768_vm6, -1.0, %v863_v51  ;;  %v3770_v24 = vmov 0  ;;  %v942_v51 = vsel %vm832_vm8, 1.5707964, %v932_v18  ;;  %vm3777_vm8 = vmmov %vm3768_vm6 }
 0x14e   :  { %v2251_v47 = vmul.f32 %v1812_v42, %v1252_v44  ;;  %v2255_v50 = vpop.eup %1813  ;;  %3767 = vst [vmem:[#allocation19_spill] sm:$0xff] %v2288_v29  ;;  %v933_v42 = vsel %vm843_vm11, 0.7853982, %v3690_v13  ;;  %v546_v44 = vmul.f32 %v2148_v43, %v2148_v43  ;;  %v3771_v24 = vsel %vm2305_vm14, 4294967295, %v3770_v24 }
 0x14f   :  { %v2249_v46 = vmul.f32 %v2229_v33, %v2229_v33  ;;  %3765 = vst [vmem:[#allocation18_spill] sm:$0xff] %v2255_v50  ;;  %3772 = vst [vmem:[#allocation21_spill] sm:$0xff] %v3771_v24  ;;  %v1253_v39 = vsel %vm1213_vm9, -1.0, %v1243_v28  ;;  %vm3773_vm7 = vcmp.gt.f32.partialorder %v2138_v38, 0.41421357  ;;  %v2326_v18 = vpop.f32.mrf.mxu0 }
 0x150   :  { %v2268_v2 = vmul.f32 %v2251_v47, %v2251_v47  ;;  %v1816_v30 = vpop.eup %1815  ;;  %v1313_v54 = vsel %vm3773_vm7, 0.7853982, %v3690_v13  ;;  %vm3774_vm11 = vcmp.gt.f32.partialorder %v2180_v5, 0.41421357  ;;  %3775 = vst [vmem:[#allocation22_spill] sm:$0xff] %v2326_v18  ;;  %vm1092_vm7 = vcmp.lt.f32.partialorder %v2040_v52, 0.0 }
 0x151   :  { %v962_v0 = vmul.f32 0.080537446, %v2249_v46  ;;  %v2300_v49 = vpop.eup %1817  ;;  %v2303_v11 = vmul.f32 %v1816_v30, %v873_v35  ;;  %v2332_v13 = vsel %vm1212_vm10, 1.5707964, %v1312_v34  ;;  %v2351_v37 = vsel %vm1213_vm9, 1.5707964, %v1313_v54  ;;  %vm3781_vm9 = vmmov %vm3774_vm11 }
 0x152   :  { %v1342_v27 = vmul.f32 0.080537446, %v2268_v2  ;;  %3769 = vst [vmem:[#allocation20_spill] sm:$0xff] %v2300_v49  ;;  %v1820_v22 = vpop.eup %1819  ;;  %vm3779_vm10 = vcmp.gt.f32.partialorder %v2223_v31, 0.41421357 }
 0x153   :  { %v1657_v25 = vadd.f32 -0.13877685, %v962_v0  ;;  %v2322_v35 = vmul.f32 %v2303_v11, %v2303_v11  ;;  %v2324_v17 = vmul.f32 %v1820_v22, %v1253_v39  ;;  %v2328_v28 = vpop.eup %1821  ;;  %v3700_v54 = vand.u32 2147483647, %v2288_v29 }
 0x154   :  { %v1687_v0 = vadd.f32 -0.13877685, %v1342_v27  ;;  %3776 = vst [vmem:[#allocation23_spill] sm:$0xff] %v2328_v28  ;;  %v2347_v21 = vpop.eup %1823 }
 0x155   :  { %v982_v48 = vmul.f32 %v1657_v25, %v2249_v46  ;;  %v864_v25 = vsel %vm3774_vm11, %v1649_v23, %v2180_v5  ;;  %v2336_v23 = vsel %vm3777_vm8, 1.5707964, %v933_v42  ;;  %v963_v32 = vmul.f32 0.080537446, %v2322_v35  ;;  %3778 = vst [vmem:[#allocation24_spill] sm:$0xff] %v2347_v21 }
 0x156   :  { %v1362_v30 = vmul.f32 %v1687_v0, %v2268_v2  ;;  %v1185_v0 = vsel %vm2305_vm14, 1.0, %v1155_v59  ;;  %v2345_v36 = vmul.f32 %v2324_v17, %v2324_v17  ;;  %v874_v34 = vsel %vm3707_vm12, -1.0, %v864_v25 }
 0x157   :  { %v992_v27 = vadd.f32 0.19977711, %v982_v48  ;;  %v1679_v48 = vadd.f32 -1.0, %v2223_v31  ;;  %v2357_v59 = vmul.f32 %v2182_v7, %v2182_v7  ;;  %v776_v42 = vand.u32 2147483647, %v2326_v18 }
 0x158   :  { %v1372_v22 = vadd.f32 0.19977711, %v1362_v30  ;;  %v1658_v10 = vadd.f32 -0.13877685, %v963_v32  ;;  %v1343_v21 = vmul.f32 0.080537446, %v2345_v36  ;;  %1831 = vrcp.f32 %v1185_v0 }
 0x159   :  { %v1002_v39 = vmul.f32 %v992_v27, %v2249_v46  ;;  %v1826_v27 = vpop.eup %1825  ;;  %v1244_v38 = vsel %vm3779_vm10, %v1679_v48, %v2223_v31  ;;  %vm2383_vm6 = vcmp.eq.f32.partialorder %v776_v42, 0.0  ;;  %vm1472_vm8 = vcmp.lt.f32.partialorder %v2042_v53, 0.0 }
 0x15a   :  { %v1382_v24 = vmul.f32 %v1372_v22, %v2268_v2  ;;  %v2362_v28 = vmul.f32 %v1826_v27, %v874_v34  ;;  %v1828_v25 = vpop.eup %1827  ;;  %v1688_v50 = vadd.f32 -0.13877685, %v1343_v21  ;;  %v3780_v22 = vmov 0.0  }
 0x15b   :  { %v1667_v30 = vadd.f32 -0.3333295, %v1002_v39  ;;  %v983_v39 = vmul.f32 %v1658_v10, %v2322_v35  ;;  %v2373_v32 = vsel %vm3781_vm9, 0.7853982, %v3780_v22  ;;  %v2381_v48 = vmul.f32 %v1828_v25, %v3700_v54  ;;  %v1830_v27 = vpop.eup %1829 }
 0x15c   :  { %v1697_v18 = vadd.f32 -0.3333295, %v1382_v24  ;;  %v2377_v34 = vmul.f32 %v2362_v28, %v2362_v28  ;;  %v1363_v21 = vmul.f32 %v1688_v50, %v2345_v36  ;;  %v1254_v54 = vsel %vm3706_vm13, -1.0, %v1244_v38 }
 0x15d   :  { %v1022_v49 = vmul.f32 %v1667_v30, %v2249_v46  ;;  %v993_v24 = vadd.f32 0.19977711, %v983_v39  ;;  %v2392_v30 = vadd.f32 %v546_v44, %v2262_v55  ;;  %vm845_vm11 = vcmp.gt.f32.partialorder %v2381_v48, 0.41421357 }
 0x15e   :  { %v1402_v46 = vmul.f32 %v1697_v18, %v2268_v2  ;;  %v964_v25 = vmul.f32 0.080537446, %v2377_v34  ;;  %v1373_v50 = vadd.f32 0.19977711, %v1363_v21  ;;  %vm1122_vm10 = vcmp.lt.f32.partialorder %v2046_v56, 0.0 }
 0x15f   :  { %v1032_v10 = vmul.f32 %v1022_v49, %v2229_v33  ;;  %v1003_v18 = vmul.f32 %v993_v24, %v2322_v35  ;;  %v2403_v44 = vmul.f32 %v1830_v27, %v1254_v54  ;;  %v885_v39 = vadd.f32 1.0, %v2381_v48 }
 0x160   :  { %v1412_v2 = vmul.f32 %v1402_v46, %v2251_v47  ;;  %v1659_v55 = vadd.f32 -0.13877685, %v964_v25  ;;  %v806_v38 = vsel %vm2383_vm6, 1.0, %v776_v42  ;;  %vm1502_vm9 = vcmp.lt.f32.partialorder %v2048_v57, 0.0  ;;  %v2430_v25 = vpop.f32.mrf.mxu1 }
 0x161   :  { %v1042_v49 = vadd.f32 %v1032_v10, %v2229_v33  ;;  %v1668_v9 = vadd.f32 -0.3333295, %v1003_v18  ;;  %v1383_v33 = vmul.f32 %v1373_v50, %v2345_v36  ;;  %v3784_v46 = vand.u32 2147483647, %v2148_v43 }
 0x162   :  { %v1422_v16 = vadd.f32 %v1412_v2, %v2251_v47  ;;  %v984_v10 = vmul.f32 %v1659_v55, %v2377_v34  ;;  %v2420_v24 = vmul.f32 %v2403_v44, %v2403_v44  ;;  %vm3708_vm12 = vcmp.gt.f32.partialorder %v2381_v48, 2.4142137 }
 0x163   :  { %v1052_v29 = vadd.f32 %v1042_v49, %v942_v51  ;;  %vm2414_vm13 = vcmp.eq.f32.partialorder %v3784_v46, 0.0  ;;  %v895_v47 = vsel %vm845_vm11, %v885_v39, 1.0  ;;  %v1023_v21 = vmul.f32 %v1668_v9, %v2322_v35 }
 0x164   :  { %v1432_v42 = vadd.f32 %v1422_v16, %v2332_v13  ;;  %v1698_v27 = vadd.f32 -0.3333295, %v1383_v33  ;;  %v994_v2 = vadd.f32 0.19977711, %v984_v10  ;;  %v1344_v18 = vmul.f32 0.080537446, %v2420_v24  ;;  %v2448_v33 = vpop.f32.mrf.mxu1 }
 0x165   :  { %v1082_v51 = vsel %vm2050_vm0, %v2141_v40, %v1052_v29  ;;  %v905_v50 = vsel %vm3708_vm12, %v2381_v48, %v895_v47  ;;  %vm1093_vm0 = vcmp.lt.f32.partialorder %v2062_v62, 0.0  ;;  %v1033_v40 = vmul.f32 %v1023_v21, %v2303_v11  ;;  %v1832_v55 = vpop.eup %1831 }
 0x166   :  { %v1102_v49 = vsub.f32 3.1415927, %v1082_v51  ;;  %v1462_v58 = vsel %vm2056_vm1, %v2193_v12, %v1432_v42  ;;  %v1403_v9 = vmul.f32 %v1698_v27, %v2345_v36  ;;  %1833 = vrcp.f32 %v806_v38 }
 0x167   :  { %v1482_v13 = vsub.f32 3.1415927, %v1462_v58  ;;  %v1004_v29 = vmul.f32 %v994_v2, %v2377_v34  ;;  %v1689_v35 = vadd.f32 -0.13877685, %v1344_v18  ;;  %vm1473_vm12 = vcmp.lt.f32.partialorder %v2064_v63, 0.0 }
 0x168   :  { %v1112_v16 = vsel %vm1092_vm7, %v1102_v49, %v1082_v51  ;;  %v1043_v60 = vadd.f32 %v1033_v40, %v2303_v11  ;;  %v1413_v12 = vmul.f32 %v1403_v9, %v2324_v17  ;;  %1835 = vrcp.f32 %v905_v50 }
 0x169   :  { %v1132_v39 = vsub.f32 0.0, %v1112_v16  ;;  %v1492_v36 = vsel %vm1472_vm8, %v1482_v13, %v1462_v58  ;;  %vm1123_vm1 = vcmp.lt.f32.partialorder %v2067_v1, 0.0  ;;  %v1669_v52 = vadd.f32 -0.3333295, %v1004_v29 }
 0x16a   :  { %v1364_v38 = vmul.f32 %v1689_v35, %v2420_v24  ;;  %v1165_v10 = vand.u32 2147483647, %v2430_v25  ;;  %v1512_v47 = vsub.f32 0.0, %v1492_v36  ;;  %v1053_v11 = vadd.f32 %v1043_v60, %v2336_v23  ;;  %v2519_v60 = vpop.f32.mrf.mxu0 }
 0x16b   :  { %v1142_v46 = vsel %vm1122_vm10, %v1132_v39, %v1112_v16  ;;  %v1423_v51 = vadd.f32 %v1413_v12, %v2324_v17  ;;  %vm1503_vm7 = vcmp.lt.f32.partialorder %v2070_v3, 0.0  ;;  %v1024_v53 = vmul.f32 %v1669_v52, %v2377_v34 }
 0x16c   :  { %v1374_v42 = vadd.f32 0.19977711, %v1364_v38  ;;  %v2463_v21 = vmul.f32 %v1832_v55, %v1165_v10  ;;  %v1156_v27 = vand.u32 2147483647, %v2448_v33  ;;  %v1522_v56 = vsel %vm1502_vm9, %v1512_v47, %v1492_v36 }
 0x16d   :  { %v1083_v23 = vsel %vm2072_vm2, %v2199_v14, %v1053_v11  ;;  %v1433_v17 = vadd.f32 %v1423_v51, %v2351_v37  ;;  %v1650_v49 = vadd.f32 -1.0, %v2381_v48  ;;  %v1532_v2 = vsub.f32 %v1142_v46, %v1522_v56  ;;  %v3804_v46 = vld [vmem:[#allocation14_spill] sm:$0xff] }
 0x16e   :  { %v1103_v34 = vsub.f32 3.1415927, %v1083_v23  ;;  %vm1094_vm8 = vcmp.lt.f32.partialorder %v2084_v8, 0.0  ;;  %v1034_v18 = vmul.f32 %v1024_v53, %v2362_v28  ;;  %v1384_v50 = vmul.f32 %v1374_v42, %v2420_v24 }
 0x16f   :  { %v1463_v57 = vsel %vm2078_vm3, %v2244_v45, %v1433_v17  ;;  %vm3787_vm10 = vcmp.gt.f32.partialorder %v2180_v5, 2.4142137  ;;  %v3788_v14 = vmov 1.5707964   ;;  %v2487_v58 = vadd.f32 %v2357_v59, %v2278_v20 }
 0x170   :  { %v944_v4 = vsel %vm3787_vm10, 1.5707964, %v2373_v32  ;;  %v1074_v37 = vsel %vm2414_vm13, 0.0, %v3788_v14  ;;  %v1113_v40 = vsel %vm1093_vm0, %v1103_v34, %v1083_v23  ;;  %v1483_v9 = vsub.f32 3.1415927, %v1463_v57 }
 0x171   :  { %3789 = vst [vmem:[#allocation25_spill] sm:$0xff] %v2487_v58  ;;  %v1044_v16 = vadd.f32 %v1034_v18, %v2362_v28  ;;  %vm1225_vm2 = vcmp.gt.f32.partialorder %v2463_v21, 0.41421357  ;;  %v1133_v6 = vsub.f32 0.0, %v1113_v40  ;;  %v1699_v45 = vadd.f32 -0.3333295, %v1384_v50 }
 0x172   :  { %v1265_v5 = vadd.f32 1.0, %v2463_v21  ;;  %vm2494_vm3 = vcmp.eq.f32.partialorder %v1156_v27, 0.0  ;;  %v1493_v20 = vsel %vm1473_vm12, %v1483_v9, %v1463_v57  ;;  %v865_v62 = vsel %vm845_vm11, %v1650_v49, %v2381_v48 }
 0x173   :  { %v1054_v59 = vadd.f32 %v1044_v16, %v944_v4  ;;  %vm1215_vm13 = vcmp.gt.f32.partialorder %v2463_v21, 2.4142137  ;;  %v1143_v28 = vsel %vm1123_vm1, %v1133_v6, %v1113_v40  ;;  %v1513_v54 = vsub.f32 0.0, %v1493_v20  ;;  %v1834_v35 = vpop.eup %1833  ;;  %v3799_v6 = vld [vmem:[#allocation15_spill] sm:$0xff]  ;;  %v3820_v40 = vld [vmem:[#allocation22_spill] sm:$0xff] }
 0x174   :  { %v1404_v13 = vmul.f32 %v1699_v45, %v2420_v24  ;;  %v1275_v29 = vsel %vm1225_vm2, %v1265_v5, 1.0  ;;  %vm3792_vm12 = vcmp.gt.f32.partialorder %v2223_v31, 0.41421357  ;;  %v1186_v1 = vsel %vm2494_vm3, 1.0, %v1156_v27 }
 0x175   :  { %v1084_v63 = vsel %vm2092_vm4, %v1074_v37, %v1054_v59  ;;  %v1314_v55 = vsel %vm3792_vm12, 0.7853982, %v3780_v22  ;;  %v1285_v39 = vsel %vm1215_vm13, %v2463_v21, %v1275_v29  ;;  %v1523_v24 = vsel %vm1503_vm7, %v1513_v54, %v1493_v20  ;;  %v1836_v36 = vpop.eup %1835  ;;  %v2558_v37 = vpop.f32.mrf.mxu1  ;;  %v3800_v29 = vld [vmem:[#allocation18_spill] sm:$0xff] }
 0x176   :  { %v1104_v12 = vsub.f32 3.1415927, %v1084_v63  ;;  %v1414_v15 = vmul.f32 %v1404_v13, %v2403_v44  ;;  %1837 = vrcp.f32 %v1285_v39  ;;  %v1533_v52 = vsub.f32 %v1143_v28, %v1523_v24  ;;  %v2567_v59 = vpop.f32.mrf.mxu0 }
 0x177   :  { %v3793_v38 = vand.u32 2147483647, %v2182_v7  ;;  %vm3796_vm9 = vcmp.gt.f32.partialorder %v2381_v48, 2.4142137  ;;  %1839 = vrcp.f32 %v1186_v1  ;;  %v786_v53 = vand.u32 2147483647, %v2519_v60  ;;  %v2584_v39 = vpop.f32.mrf.mxu1 }
 0x178   :  { %v875_v47 = vsel %vm3796_vm9, -1.0, %v865_v62  ;;  %v1114_v3 = vsel %vm1094_vm8, %v1104_v12, %v1084_v63  ;;  %v1424_v11 = vadd.f32 %v1414_v15, %v2403_v44  ;;  %v1542_v42 = vmul.f32 %v1532_v2, %v1532_v2  ;;  %v3801_v63 = vld [vmem:[#allocation20_spill] sm:$0xff]  ;;  %v3803_v1 = vld [vmem:[#allocation23_spill] sm:$0xff] }
 0x179   :  { %vm2526_vm4 = vcmp.eq.f32.partialorder %v3793_v38, 0.0  ;;  %v2535_v51 = vmul.f32 %v1836_v36, %v875_v47  ;;  %v1543_v27 = vmul.f32 %v1533_v52, %v1533_v52  ;;  %v1134_v56 = vsub.f32 0.0, %v1114_v3 }
 0x17a   :  { %vm3797_vm0 = vcmp.gt.f32.partialorder %v2223_v31, 2.4142137  ;;  %vm1124_vm1 = vcmp.lt.f32.partialorder %v2148_v43, 0.0  ;;  %v2545_v8 = vmul.f32 %v1834_v35, %v786_v53  ;;  %1841 = vrsqrt.f32 %v2392_v30 }
 0x17b   :  { %v1324_v23 = vsel %vm3797_vm0, 1.5707964, %v1314_v55  ;;  %v955_v49 = vmul.f32 %v2535_v51, %v2535_v51  ;;  %v1552_v44 = vadd.f32 %v1543_v27, %v1542_v42  ;;  %v1144_v34 = vsel %vm1124_vm1, %v1134_v56, %v1114_v3 }
 0x17c   :  { %v1434_v17 = vadd.f32 %v1424_v11, %v1324_v23  ;;  %v1454_v2 = vsel %vm2526_vm4, 0.0, %v3788_v14  ;;  %v1680_v18 = vadd.f32 -1.0, %v2463_v21  ;;  %vm3709_vm7 = vcmp.gt.f32.partialorder %v2545_v8, 0.41421357 }
 0x17d   :  { %v965_v43 = vmul.f32 0.080537446, %v955_v49  ;;  %1843 = vrsqrt.f32 %v2487_v58  ;;  %v886_v4 = vadd.f32 1.0, %v2545_v8  ;;  %vm836_vm8 = vcmp.gt.f32.partialorder %v2545_v8, 2.4142137 }
 0x17e   :  { %v1464_v31 = vsel %vm2100_vm5, %v1454_v2, %v1434_v17  ;;  %vm1474_vm5 = vcmp.lt.f32.partialorder %v3798_v19, 0.0  ;;  %v1245_v54 = vsel %vm1225_vm2, %v1680_v18, %v2463_v21  ;;  %v2577_v35 = vmul.f32 %v3800_v29, %v2117_v26 }
 0x17f   :  { %v1484_v57 = vsub.f32 3.1415927, %v1464_v31  ;;  %v1660_v16 = vadd.f32 -0.13877685, %v965_v43  ;;  %v896_v20 = vsel %vm3709_vm7, %v886_v4, 1.0  ;;  %v2581_v55 = vmul.f32 %v3801_v63, %v2143_v41  ;;  %v3812_v63 = vld [vmem:[#allocation17_spill] sm:$0xff] }
 0x180   :  { %v906_v13 = vsel %vm836_vm8, %v2545_v8, %v896_v20  ;;  %vm1504_vm10 = vcmp.lt.f32.partialorder %v2182_v7, 0.0  ;;  %v2588_v24 = vmul.f32 %v3803_v1, %v2170_v61  ;;  %v777_v36 = vand.u32 2147483647, %v2567_v59 }
 0x181   :  { %v1494_v5 = vsel %vm1474_vm5, %v1484_v57, %v1464_v31  ;;  %v985_v28 = vmul.f32 %v1660_v16, %v955_v49  ;;  %3802 = vst [vmem:[#allocation12_spill] sm:$0xff] %v2581_v55  ;;  %1845 = vrcp.f32 %v906_v13  ;;  %v537_v47 = vmul.f32 %v3804_v46, %v3804_v46 }
 0x182   :  { %v1514_v62 = vsub.f32 0.0, %v1494_v5  ;;  %v1255_v3 = vsel %vm1215_vm13, -1.0, %v1245_v54  ;;  %v1166_v7 = vand.u32 2147483647, %v2558_v37  ;;  %vm2598_vm12 = vcmp.eq.f32.partialorder %v777_v36, 0.0 }
 0x183   :  { %v995_v15 = vadd.f32 0.19977711, %v985_v28  ;;  %v1838_v52 = vpop.eup %1837  ;;  %v1157_v23 = vand.u32 2147483647, %v2584_v39  ;;  %v807_v43 = vsel %vm2598_vm12, 1.0, %v777_v36  ;;  %v647_v16 = vmul.f32 %v2430_v25, %v2430_v25  ;;  %v2640_v36 = vpop.f32.mrf.mxu0 }
 0x184   :  { %v1524_v12 = vsel %vm1504_vm10, %v1514_v62, %v1494_v5  ;;  %v1840_v11 = vpop.eup %1839  ;;  %v2596_v27 = vmul.f32 %v1838_v52, %v1255_v3  ;;  %1847 = vrcp.f32 %v807_v43  ;;  %v1651_v5 = vadd.f32 -1.0, %v2545_v8  ;;  %v3810_v62 = vld [vmem:[#allocation24_spill] sm:$0xff]  ;;  %v2659_v43 = vpop.f32.mrf.mxu1 }
 0x185   :  { %v1534_v38 = vsub.f32 %v1144_v34, %v1524_v12  ;;  %v1005_v42 = vmul.f32 %v995_v15, %v955_v49  ;;  %v3807_v34 = vld [vmem:[#allocation19_spill] sm:$0xff]  ;;  %v2607_v31 = vmul.f32 %v1840_v11, %v1166_v7  ;;  %vm2615_vm4 = vcmp.eq.f32.partialorder %v1157_v23, 0.0 }
 0x186   :  { %v547_v2 = vmul.f32 %v3807_v34, %v3807_v34  ;;  %v2613_v57 = vmul.f32 %v2596_v27, %v2596_v27  ;;  %v2627_v28 = vmul.f32 %v3810_v62, %v3799_v6  ;;  %v935_v12 = vsel %vm845_vm11, 0.7853982, %v3780_v22 }
 0x187   :  { %v1544_v17 = vmul.f32 %v1534_v38, %v1534_v38  ;;  %v1670_v18 = vadd.f32 -0.3333295, %v1005_v42  ;;  %vm1226_vm9 = vcmp.gt.f32.partialorder %v2607_v31, 0.41421357  ;;  %v1842_v20 = vpop.eup %1841  ;;  %v1266_v29 = vadd.f32 1.0, %v2607_v31 }
 0x188   :  { %3811 = vst [vmem:[#allocation18_spill] sm:$0xff] %v2627_v28  ;;  %v1345_v13 = vmul.f32 0.080537446, %v2613_v57  ;;  %v2633_v1 = vadd.f32 %v547_v2, %v537_v47  ;;  %v1187_v15 = vsel %vm2615_vm4, 1.0, %v1157_v23  ;;  %vm1095_vm0 = vcmp.lt.f32.partialorder %v3804_v46, 0.0 }
 0x189   :  { %v2619_v19 = vadd.f32 %v1552_v44, %v1544_v17  ;;  %v1025_v54 = vmul.f32 %v1670_v18, %v955_v49  ;;  %v637_v44 = vmul.f32 %v3812_v63, %v3812_v63  ;;  %vm3711_vm1 = vcmp.gt.f32.partialorder %v2607_v31, 2.4142137 }
 0x18a   :  { %v1844_v52 = vpop.eup %1843  ;;  %v1690_v38 = vadd.f32 -0.13877685, %v1345_v13  ;;  %v1276_v47 = vsel %vm1226_vm9, %v1266_v29, 1.0  ;;  %v866_v11 = vsel %vm3709_vm7, %v1651_v5, %v2545_v8  ;;  %1849 = vrcp.f32 %v1187_v15 }
 0x18b   :  { %v1035_v49 = vmul.f32 %v1025_v54, %v2535_v51  ;;  %v2647_v3 = vadd.f32 %v647_v16, %v637_v44  ;;  %v1286_v42 = vsel %vm3711_vm1, %v2607_v31, %v1276_v47  ;;  %v3814_v17 = vand.u32 2147483647, %v3807_v34 }
 0x18c   :  { %v1365_v2 = vmul.f32 %v1690_v38, %v2613_v57  ;;  %1851 = vrcp.f32 %v1286_v42  ;;  %v2662_v18 = vmul.f32 %v1842_v20, %v2392_v30  ;;  %v2665_v16 = vmul.f32 %v1844_v52, %v2487_v58 }
 0x18d   :  { %3813 = vst [vmem:[#allocation20_spill] sm:$0xff] %v2647_v3  ;;  %v1045_v23 = vadd.f32 %v1035_v49, %v2535_v51  ;;  %vm1065_vm11 = vcmp.eq.f32.partialorder %v3814_v17, 0.0  ;;  %vm3816_vm5 = vcmp.gt.f32.partialorder %v2381_v48, 2.4142137  ;;  %vm1445_vm10 = vcmp.eq.f32.partialorder %v1165_v10, 0.0  ;;  %v2671_v51 = vpop.f32.mrf.mxu0  ;;  %v2686_v49 = vpop.f32.mrf.mxu1 }
 0x18e   :  { %3815 = vst [vmem:[#allocation23_spill] sm:$0xff] %v2665_v16  ;;  %v945_v5 = vsel %vm3816_vm5, 1.5707964, %v935_v12  ;;  %v1846_v62 = vpop.eup %1845  ;;  %1853 = vrsqrt.f32 %v2633_v1  ;;  %v1375_v13 = vadd.f32 0.19977711, %v1365_v2  ;;  %v876_v20 = vsel %vm836_vm8, -1.0, %v866_v11 }
 0x18f   :  { %v1055_v54 = vadd.f32 %v1045_v23, %v945_v5  ;;  %v1075_v29 = vsel %vm1065_vm11, 0.0, %v3788_v14  ;;  %vm1125_vm7 = vcmp.lt.f32.partialorder %v3807_v34, 0.0  ;;  %1855 = vrsqrt.f32 %v2647_v3 }
 0x190   :  { %v2679_v48 = vmul.f32 %v1846_v62, %v876_v20  ;;  %v1385_v12 = vmul.f32 %v1375_v13, %v2613_v57  ;;  %v1455_v15 = vsel %vm1445_vm10, 0.0, %v3788_v14  ;;  %v778_v52 = vand.u32 2147483647, %v2671_v51 }
 0x191   :  { %v1085_v10 = vsel %vm2225_vm15, %v1075_v29, %v1055_v54  ;;  %v1315_v47 = vsel %vm1225_vm2, 0.7853982, %v3780_v22  ;;  %v1681_v42 = vadd.f32 -1.0, %v2607_v31  ;;  %v548_v17 = vmul.f32 %v2519_v60, %v2519_v60  ;;  %v1848_v62 = vpop.eup %1847 }
 0x192   :  { %v1105_v38 = vsub.f32 3.1415927, %v1085_v10  ;;  %v2693_v11 = vmul.f32 %v2679_v48, %v2679_v48  ;;  %v1700_v23 = vadd.f32 -0.3333295, %v1385_v12  ;;  %v3710_v2 = vand.u32 2147483647, %v2640_v36 }
 0x193   :  { %vm2699_vm15 = vcmp.eq.f32.partialorder %v778_v52, 0.0  ;;  %v1158_v29 = vand.u32 2147483647, %v2686_v49  ;;  %v538_v9 = vmul.f32 %v3820_v40, %v3820_v40  ;;  %v638_v46 = vmul.f32 %v2448_v33, %v2448_v33 }
 0x194   :  { %v1115_v54 = vsel %vm1095_vm0, %v1105_v38, %v1085_v10  ;;  %v966_v13 = vmul.f32 0.080537446, %v2693_v11  ;;  %v808_v20 = vsel %vm2699_vm15, 1.0, %v778_v52  ;;  %v1405_v12 = vmul.f32 %v1700_v23, %v2613_v57 }
 0x195   :  { %v1135_v44 = vsub.f32 0.0, %v1115_v54  ;;  %v2712_v45 = vmul.f32 %v1848_v62, %v3710_v2  ;;  %1857 = vrcp.f32 %v808_v20  ;;  %v1246_v52 = vsel %vm1226_vm9, %v1681_v42, %v2607_v31 }
 0x196   :  { %v1661_v10 = vadd.f32 -0.13877685, %v966_v13  ;;  %vm1475_vm2 = vcmp.lt.f32.partialorder %v3812_v63, 0.0  ;;  %v1325_v38 = vsel %vm1215_vm13, 1.5707964, %v1315_v47  ;;  %v1415_v23 = vmul.f32 %v1405_v12, %v2596_v27 }
 0x197   :  { %v1145_v57 = vsel %vm1125_vm7, %v1135_v44, %v1115_v54  ;;  %vm847_vm0 = vcmp.gt.f32.partialorder %v2712_v45, 0.41421357  ;;  %v887_v13 = vadd.f32 1.0, %v2712_v45  ;;  %v3712_v20 = vand.u32 2147483647, %v2659_v43  ;;  %v1850_v50 = vpop.eup %1849 }
 0x198   :  { %v986_v62 = vmul.f32 %v1661_v10, %v2693_v11  ;;  %vm2731_vm11 = vcmp.eq.f32.partialorder %v1158_v29, 0.0  ;;  %v1425_v34 = vadd.f32 %v1415_v23, %v2596_v27  ;;  %v2736_v54 = vadd.f32 %v548_v17, %v538_v9 }
 0x199   :  { %v648_v21 = vmul.f32 %v2558_v37, %v2558_v37  ;;  %v1256_v47 = vsel %vm3711_vm1, -1.0, %v1246_v52  ;;  %v1852_v44 = vpop.eup %1851  ;;  %vm1505_vm13 = vcmp.lt.f32.partialorder %v2430_v25, 0.0  ;;  %vm3713_vm7 = vcmp.gt.f32.partialorder %v2712_v45, 2.4142137 }
 0x19a   :  { %v996_v12 = vadd.f32 0.19977711, %v986_v62  ;;  %v897_v10 = vsel %vm847_vm0, %v887_v13, 1.0  ;;  %v2748_v27 = vmul.f32 %v1850_v50, %v3712_v20  ;;  %v1435_v9 = vadd.f32 %v1425_v34, %v1325_v38 }
 0x19b   :  { %v2750_v17 = vmul.f32 %v1852_v44, %v1256_v47  ;;  %v907_v52 = vsel %vm3713_vm7, %v2712_v45, %v897_v10  ;;  %v1188_v23 = vsel %vm2731_vm11, 1.0, %v1158_v29  ;;  %v2757_v62 = vpop.eup %1853  ;;  %vm2762_vm5 = vcmp.eq.f32.partialorder %v786_v53, 0.0  ;;  %v2779_v44 = vpop.f32.mrf.mxu0 }
 0x19c   :  { %v1006_v2 = vmul.f32 %v996_v12, %v2693_v11  ;;  %1859 = vrcp.f32 %v907_v52  ;;  %vm1227_vm10 = vcmp.gt.f32.partialorder %v2748_v27, 0.41421357  ;;  %v2767_v50 = vpop.eup %1855  ;;  %v1465_v34 = vsel %vm2305_vm14, %v1455_v15, %v1435_v9 }
 0x19d   :  { %3825 = vst [vmem:[#allocation14_spill] sm:$0xff] %v2767_v50  ;;  %vm3827_vm1 = vcmp.gt.f32.partialorder %v2545_v8, 0.41421357  ;;  %v2776_v47 = vmul.f32 %v2750_v17, %v2750_v17  ;;  %v1267_v53 = vadd.f32 1.0, %v2748_v27  ;;  %v1485_v12 = vsub.f32 3.1415927, %v1465_v34 }
 0x19e   :  { %v936_v29 = vsel %vm3827_vm1, 0.7853982, %v3780_v22  ;;  %v1671_v10 = vadd.f32 -0.3333295, %v1006_v2  ;;  %v2781_v52 = vadd.f32 %v648_v21, %v638_v46  ;;  %1861 = vrcp.f32 %v1188_v23 }
 0x19f   :  { %v1346_v38 = vmul.f32 0.080537446, %v2776_v47  ;;  %vm2786_vm14 = vcmp.eq.f32.partialorder %v1166_v7, 0.0  ;;  %vm3715_vm1 = vcmp.gt.f32.partialorder %v2748_v27, 2.4142137  ;;  %v1277_v9 = vsel %vm1227_vm10, %v1267_v53, 1.0 }
 0x1a0   :  { %3828 = vst [vmem:[#allocation19_spill] sm:$0xff] %v2781_v52  ;;  %v1495_v20 = vsel %vm1475_vm2, %v1485_v12, %v1465_v34  ;;  %v1026_v2 = vmul.f32 %v1671_v10, %v2693_v11  ;;  %v1287_v46 = vsel %vm3715_vm1, %v2748_v27, %v1277_v9  ;;  %v3716_v21 = vand.u32 2147483647, %v2779_v44 }
 0x1a1   :  { %v1515_v7 = vsub.f32 0.0, %v1495_v20  ;;  %v1691_v23 = vadd.f32 -0.13877685, %v1346_v38  ;;  %v1652_v16 = vadd.f32 -1.0, %v2712_v45  ;;  %1863 = vrcp.f32 %v1287_v46 }
 0x1a2   :  { %v1858_v50 = vpop.eup %1857  ;;  %vm1096_vm7 = vcmp.lt.f32.partialorder %v3820_v40, 0.0  ;;  %1865 = vrsqrt.f32 %v2736_v54  ;;  %v946_v63 = vsel %vm836_vm8, 1.5707964, %v936_v29  ;;  %v1036_v11 = vmul.f32 %v1026_v2, %v2679_v48  ;;  %v2834_v2 = vpop.f32.mrf.mxu1 }
 0x1a3   :  { %v1076_v34 = vsel %vm2762_vm5, 0.0, %v3788_v14  ;;  %v1525_v53 = vsel %vm1505_vm13, %v1515_v7, %v1495_v20  ;;  %v1366_v12 = vmul.f32 %v1691_v23, %v2776_v47  ;;  %v549_v10 = vmul.f32 %v2640_v36, %v2640_v36 }
 0x1a4   :  { %v2816_v38 = vmul.f32 %v1858_v50, %v3716_v21  ;;  %v1535_v8 = vsub.f32 %v1145_v57, %v1525_v53  ;;  %v1046_v29 = vadd.f32 %v1036_v11, %v2679_v48  ;;  %v2822_v13 = vsel %vm2786_vm14, 0.0, %v3788_v14 }
 0x1a5   :  { %v539_v25 = vmul.f32 %v2567_v59, %v2567_v59  ;;  %vm1126_vm8 = vcmp.lt.f32.partialorder %v2519_v60, 0.0  ;;  %1867 = vrsqrt.f32 %v2781_v52  ;;  %v1376_v20 = vadd.f32 0.19977711, %v1366_v12  ;;  %v2854_v12 = vpop.f32.mrf.mxu0 }
 0x1a6   :  { %v867_v50 = vsel %vm847_vm0, %v1652_v16, %v2712_v45  ;;  %vm848_vm2 = vcmp.gt.f32.partialorder %v2816_v38, 0.41421357  ;;  %v1545_v48 = vmul.f32 %v1535_v8, %v1535_v8  ;;  %v1056_v57 = vadd.f32 %v1046_v29, %v946_v63 }
 0x1a7   :  { %v1682_v15 = vadd.f32 -1.0, %v2748_v27  ;;  %v888_v9 = vadd.f32 1.0, %v2816_v38  ;;  %v1316_v46 = vsel %vm1226_vm9, 0.7853982, %v3780_v22  ;;  %v1386_v7 = vmul.f32 %v1376_v20, %v2776_v47 }
 0x1a8   :  { %v2842_v23 = vmul.f32 %v2584_v39, %v2584_v39  ;;  %v2844_v16 = vadd.f32 %v549_v10, %v539_v25  ;;  %v2847_v63 = vadd.f32 %v2619_v19, %v1545_v48  ;;  %v1086_v11 = vsel %vm2383_vm6, %v1076_v34, %v1056_v57  ;;  %v2867_v48 = vpop.f32.mrf.mxu1 }
 0x1a9   :  { %vm838_vm13 = vcmp.gt.f32.partialorder %v2816_v38, 2.4142137  ;;  %v898_v53 = vsel %vm848_vm2, %v888_v9, 1.0  ;;  %v1860_v8 = vpop.eup %1859  ;;  %v1106_v29 = vsub.f32 3.1415927, %v1086_v11  ;;  %v1247_v0 = vsel %vm1227_vm10, %v1682_v15, %v2748_v27 }
 0x1aa   :  { %v1701_v20 = vadd.f32 -0.3333295, %v1386_v7  ;;  %vm3831_vm9 = vcmp.gt.f32.partialorder %v2712_v45, 2.4142137  ;;  %v908_v19 = vsel %vm838_vm13, %v2816_v38, %v898_v53  ;;  %v3714_v34 = vand.u32 2147483647, %v2834_v2 }
 0x1ab   :  { %v877_v10 = vsel %vm3831_vm9, -1.0, %v867_v50  ;;  %1869 = vrcp.f32 %v908_v19  ;;  %v1862_v57 = vpop.eup %1861  ;;  %v1116_v9 = vsel %vm1096_vm7, %v1106_v29, %v1086_v11  ;;  %vm3832_vm6 = vcmp.gt.f32.partialorder %v2607_v31, 2.4142137 }
 0x1ac   :  { %v2861_v25 = vmul.f32 %v1860_v8, %v877_v10  ;;  %v1326_v50 = vsel %vm3832_vm6, 1.5707964, %v1316_v46  ;;  %v1406_v7 = vmul.f32 %v1701_v20, %v2776_v47  ;;  %v779_v53 = vand.u32 2147483647, %v2854_v12 }
 0x1ad   :  { %v1136_v8 = vsub.f32 0.0, %v1116_v9  ;;  %1871 = vrsqrt.f32 %v2844_v16  ;;  %v2882_v10 = vmul.f32 %v1862_v57, %v3714_v34  ;;  %vm1476_vm7 = vcmp.lt.f32.partialorder %v2448_v33, 0.0  ;;  %v2965_v33 = vpop.f32.mrf.mxu1 }
 0x1ae   :  { %v2878_v15 = vmul.f32 %v2861_v25, %v2861_v25  ;;  %v1416_v40 = vmul.f32 %v1406_v7, %v2750_v17  ;;  %v3833_v31 = vand.u32 2147483647, %v2640_v36  ;;  %v1257_v46 = vsel %vm3715_vm1, -1.0, %v1247_v0  ;;  %v1864_v29 = vpop.eup %1863 }
 0x1af   :  { %v1159_v11 = vand.u32 2147483647, %v2867_v48  ;;  %v1146_v20 = vsel %vm1126_vm8, %v1136_v8, %v1116_v9  ;;  %vm1228_vm14 = vcmp.gt.f32.partialorder %v2882_v10, 0.41421357  ;;  %vm2899_vm9 = vcmp.eq.f32.partialorder %v779_v53, 0.0  ;;  %v2903_v7 = vpop.eup %1865 }
 0x1b0   :  { %vm2888_vm5 = vcmp.eq.f32.partialorder %v3833_v31, 0.0  ;;  %v967_v19 = vmul.f32 0.080537446, %v2878_v15  ;;  %v1426_v31 = vadd.f32 %v1416_v40, %v2750_v17  ;;  %v649_v0 = vmul.f32 %v2659_v43, %v2659_v43 }
 0x1b1   :  { %v2908_v34 = vmul.f32 %v1864_v29, %v1257_v46  ;;  %v1268_v60 = vadd.f32 1.0, %v2882_v10  ;;  %v1653_v8 = vadd.f32 -1.0, %v2816_v38  ;;  %vm1218_vm6 = vcmp.gt.f32.partialorder %v2882_v10, 2.4142137 }
 0x1b2   :  { %v1662_v9 = vadd.f32 -0.13877685, %v967_v19  ;;  %vm2914_vm1 = vcmp.eq.f32.partialorder %v1159_v11, 0.0  ;;  %v1436_v52 = vadd.f32 %v1426_v31, %v1326_v50  ;;  %v809_v46 = vsel %vm2899_vm9, 1.0, %v779_v53  ;;  %v2924_v29 = vpop.eup %1867 }
 0x1b3   :  { %v1337_v17 = vmul.f32 %v2908_v34, %v2908_v34  ;;  %v1278_v40 = vsel %vm1228_vm14, %v1268_v60, 1.0  ;;  %3840 = vst [vmem:[#allocation24_spill] sm:$0xff] %v2924_v29  ;;  %v2930_v3 = vsel %vm2888_vm5, 0.0, %v3788_v14  ;;  %v3841_v50 = vand.u32 2147483647, %v2659_v43 }
 0x1b4   :  { %v987_v19 = vmul.f32 %v1662_v9, %v2878_v15  ;;  %v1288_v31 = vsel %vm1218_vm6, %v2882_v10, %v1278_v40  ;;  %v1466_v53 = vsel %vm2494_vm3, %v2822_v13, %v1436_v52  ;;  %v1189_v9 = vsel %vm2914_vm1, 1.0, %v1159_v11 }
 0x1b5   :  { %vm1447_vm8 = vcmp.eq.f32.partialorder %v3841_v50, 0.0  ;;  %v1347_v60 = vmul.f32 0.080537446, %v1337_v17  ;;  %1873 = vrcp.f32 %v1288_v31  ;;  %v1486_v29 = vsub.f32 3.1415927, %v1466_v53 }
 0x1b6   :  { %v997_v47 = vadd.f32 0.19977711, %v987_v19  ;;  %v868_v58 = vsel %vm848_vm2, %v1653_v8, %v2816_v38  ;;  %1875 = vrcp.f32 %v809_v46  ;;  %v2946_v50 = vadd.f32 %v649_v0, %v2842_v23  ;;  %v2958_v8 = vpop.f32.mrf.mxu0 }
 0x1b7   :  { %v1692_v40 = vadd.f32 -0.13877685, %v1347_v60  ;;  %v2949_v28 = vsel %vm1447_vm8, 0.0, %v3788_v14  ;;  %v540_v32 = vmul.f32 %v2671_v51, %v2671_v51  ;;  %v1496_v52 = vsel %vm1476_vm7, %v1486_v29, %v1466_v53 }
 0x1b8   :  { %3842 = vst [vmem:[#allocation17_spill] sm:$0xff] %v2946_v50  ;;  %v1007_v13 = vmul.f32 %v997_v47, %v2878_v15  ;;  %v550_v11 = vmul.f32 %v2779_v44, %v2779_v44  ;;  %1877 = vrcp.f32 %v1189_v9  ;;  %v1870_v23 = vpop.eup %1869  ;;  %v1516_v0 = vsub.f32 0.0, %v1496_v52  ;;  %v2987_v41 = vpop.f32.mrf.mxu0 }
 0x1b9   :  { %v937_v46 = vsel %vm847_vm0, 0.7853982, %v3780_v22  ;;  %v1367_v19 = vmul.f32 %v1692_v40, %v1337_v17  ;;  %v878_v31 = vsel %vm838_vm13, -1.0, %v868_v58  ;;  %v1317_v53 = vsel %vm1227_vm10, 0.7853982, %v3780_v22 }
 0x1ba   :  { %v1672_v29 = vadd.f32 -0.3333295, %v1007_v13  ;;  %v2970_v60 = vmul.f32 %v1870_v23, %v878_v31  ;;  %v1683_v9 = vadd.f32 -1.0, %v2882_v10  ;;  %v2973_v47 = vpop.eup %1871  ;;  %vm3844_vm3 = vcmp.lt.f32.partialorder %v2558_v37, 0.0 }
 0x1bb   :  { %3843 = vst [vmem:[#allocation16_spill] sm:$0xff] %v2973_v47  ;;  %v1526_v55 = vsel %vm3844_vm3, %v1516_v0, %v1496_v52  ;;  %1879 = vrsqrt.f32 %v2946_v50  ;;  %v1377_v40 = vadd.f32 0.19977711, %v1367_v19  ;;  %v650_v58 = vmul.f32 %v2834_v2, %v2834_v2 }
 0x1bc   :  { %v1536_v13 = vsub.f32 %v1146_v20, %v1526_v55  ;;  %v1027_v6 = vmul.f32 %v1672_v29, %v2878_v15  ;;  %v640_v23 = vmul.f32 %v2686_v49, %v2686_v49  ;;  %v2985_v31 = vmul.f32 %v2970_v60, %v2970_v60  ;;  %v2995_v55 = vpop.f32.mrf.mxu1 }
 0x1bd   :  { %vm3845_vm0 = vcmp.gt.f32.partialorder %v2712_v45, 2.4142137  ;;  %vm3846_vm10 = vcmp.gt.f32.partialorder %v2748_v27, 2.4142137  ;;  %v1387_v0 = vmul.f32 %v1377_v40, %v1337_v17  ;;  %v2993_v19 = vadd.f32 %v550_v11, %v540_v32 }
 0x1be   :  { %v947_v37 = vsel %vm3845_vm0, 1.5707964, %v937_v46  ;;  %v1327_v52 = vsel %vm3846_vm10, 1.5707964, %v1317_v53  ;;  %v1546_v15 = vmul.f32 %v1536_v13, %v1536_v13  ;;  %v1037_v20 = vmul.f32 %v1027_v6, %v2861_v25 }
 0x1bf   :  { %v968_v29 = vmul.f32 0.080537446, %v2985_v31  ;;  %v1248_v50 = vsel %vm1228_vm14, %v1683_v9, %v2882_v10  ;;  %v1702_v47 = vadd.f32 -0.3333295, %v1387_v0  ;;  %v3847_v45 = vand.u32 2147483647, %v2779_v44 }
 0x1c0   :  { %v3008_v32 = vadd.f32 %v650_v58, %v640_v23  ;;  %v780_v11 = vand.u32 2147483647, %v2987_v41  ;;  %v3012_v46 = vadd.f32 %v2847_v63, %v1546_v15  ;;  %v1047_v6 = vadd.f32 %v1037_v20, %v2861_v25 }
 0x1c1   :  { %vm3004_vm7 = vcmp.eq.f32.partialorder %v3847_v45, 0.0  ;;  %v1663_v53 = vadd.f32 -0.13877685, %v968_v29  ;;  %v1160_v40 = vand.u32 2147483647, %v2995_v55  ;;  %v1407_v9 = vmul.f32 %v1702_v47, %v1337_v17 }
 0x1c2   :  { %3850 = vst [vmem:[#allocation22_spill] sm:$0xff] %v3008_v32  ;;  %v1258_v13 = vsel %vm1218_vm6, -1.0, %v1248_v50  ;;  %v789_v0 = vand.u32 2147483647, %v2958_v8  ;;  %vm3019_vm5 = vcmp.eq.f32.partialorder %v780_v11, 0.0  ;;  %v1874_v58 = vpop.eup %1873  ;;  %v1057_v23 = vadd.f32 %v1047_v6, %v947_v37 }
 0x1c3   :  { %v988_v63 = vmul.f32 %v1663_v53, %v2985_v31  ;;  %v810_v25 = vsel %vm3019_vm5, 1.0, %v780_v11  ;;  %vm3026_vm8 = vcmp.eq.f32.partialorder %v1160_v40, 0.0  ;;  %v3853_v15 = vmov 0  ;;  %v1876_v17 = vpop.eup %1875 }
 0x1c4   :  { %v3854_v15 = vsel %vm3026_vm8, 4294967295, %v3853_v15  ;;  %v1417_v50 = vmul.f32 %v1407_v9, %v2908_v34  ;;  %v3031_v47 = vmul.f32 %v1874_v58, %v1258_v13  ;;  %1881 = vrcp.f32 %v810_v25 }
 0x1c5   :  { %3855 = vst [vmem:[#allocation21_spill] sm:$0xff] %v3854_v15  ;;  %v1190_v20 = vsel %vm3026_vm8, 1.0, %v1160_v40  ;;  %1883 = vrsqrt.f32 %v2993_v19  ;;  %v998_v37 = vadd.f32 0.19977711, %v988_v63  ;;  %v3039_v29 = vsel %vm3004_vm7, 0.0, %v3788_v14  ;;  %v1878_v6 = vpop.eup %1877 }
 0x1c6   :  { %v3041_v11 = vmul.f32 %v1876_v17, %v789_v0  ;;  %vm1097_vm3 = vcmp.lt.f32.partialorder %v2567_v59, 0.0  ;;  %v1427_v53 = vadd.f32 %v1417_v50, %v2908_v34  ;;  %v938_v9 = vsel %vm848_vm2, 0.7853982, %v3780_v22 }
 0x1c7   :  { %v3050_v40 = vmul.f32 %v3031_v47, %v3031_v47  ;;  %1885 = vrcp.f32 %v1190_v20  ;;  %v1008_v27 = vmul.f32 %v998_v37, %v2985_v31  ;;  %v1169_v13 = vand.u32 2147483647, %v2965_v33 }
 0x1c8   :  { %1887 = vrsqrt.f32 %v3008_v32  ;;  %vm849_vm0 = vcmp.gt.f32.partialorder %v3041_v11, 0.41421357  ;;  %v1087_v34 = vsel %vm2598_vm12, %v2930_v3, %v1057_v23  ;;  %v1437_v58 = vadd.f32 %v1427_v53, %v1327_v52  ;;  %v3061_v17 = vpop.eup %1879 }
 0x1c9   :  { %v1348_v63 = vmul.f32 0.080537446, %v3050_v40  ;;  %v889_v25 = vadd.f32 1.0, %v3041_v11  ;;  %3856 = vst [vmem:[#allocation26_spill] sm:$0xff] %v3061_v17  ;;  %vm1477_vm2 = vcmp.lt.f32.partialorder %v2584_v39, 0.0  ;;  %v3068_v32 = vmul.f32 %v1878_v6, %v1169_v13 }
 0x1ca   :  { %v948_v50 = vsel %vm838_vm13, 1.5707964, %v938_v9  ;;  %v1673_v20 = vadd.f32 -0.3333295, %v1008_v27  ;;  %v3857_v37 = vand.u32 2147483647, %v2834_v2  ;;  %v551_v3 = vmul.f32 %v2958_v8, %v2958_v8 }
 0x1cb   :  { %v1693_v56 = vadd.f32 -0.13877685, %v1348_v63  ;;  %vm839_vm12 = vcmp.gt.f32.partialorder %v3041_v11, 2.4142137  ;;  %v899_v52 = vsel %vm849_vm0, %v889_v25, 1.0  ;;  %v1467_v38 = vsel %vm2615_vm4, %v2949_v28, %v1437_v58 }
 0x1cc   :  { %vm1448_vm10 = vcmp.eq.f32.partialorder %v3857_v37, 0.0  ;;  %v1107_v23 = vsub.f32 3.1415927, %v1087_v34  ;;  %v1028_v53 = vmul.f32 %v1673_v20, %v2985_v31  ;;  %v909_v6 = vsel %vm839_vm12, %v3041_v11, %v899_v52 }
 0x1cd   :  { %v1368_v9 = vmul.f32 %v1693_v56, %v3050_v40  ;;  %v3084_v27 = vsel %vm1448_vm10, 0.0, %v3788_v14  ;;  %v541_v63 = vmul.f32 %v2854_v12, %v2854_v12  ;;  %1889 = vrcp.f32 %v909_v6  ;;  %v3104_v6 = vpop.f32.mrf.mxu0 }
 0x1ce   :  { %v1038_v25 = vmul.f32 %v1028_v53, %v2970_v60  ;;  %v1318_v4 = vsel %vm1228_vm14, 0.7853982, %v3780_v22  ;;  %v651_v28 = vmul.f32 %v2965_v33, %v2965_v33  ;;  %vm1229_vm4 = vcmp.gt.f32.partialorder %v3068_v32, 0.41421357 }
 0x1cf   :  { %vm1127_vm13 = vcmp.lt.f32.partialorder %v2640_v36, 0.0  ;;  %v1487_v31 = vsub.f32 3.1415927, %v1467_v38  ;;  %v1378_v58 = vadd.f32 0.19977711, %v1368_v9  ;;  %vm1069_vm7 = vcmp.eq.f32.partialorder %v789_v0, 0.0 }
 0x1d0   :  { %v1269_v20 = vadd.f32 1.0, %v3068_v32  ;;  %v1117_v37 = vsel %vm1097_vm3, %v1107_v23, %v1087_v34  ;;  %v641_v56 = vmul.f32 %v2867_v48, %v2867_v48  ;;  %v3101_v52 = vadd.f32 %v551_v3, %v541_v63  ;;  %v3122_v63 = vpop.f32.mrf.mxu1 }
 0x1d1   :  { %v1654_v53 = vadd.f32 -1.0, %v3041_v11  ;;  %vm1507_vm14 = vcmp.lt.f32.partialorder %v2659_v43, 0.0  ;;  %v1048_v17 = vadd.f32 %v1038_v25, %v2970_v60  ;;  %v1388_v0 = vmul.f32 %v1378_v58, %v3050_v40  ;;  %v1882_v34 = vpop.eup %1881 }
 0x1d2   :  { %vm1219_vm10 = vcmp.gt.f32.partialorder %v3068_v32, 2.4142137  ;;  %v1279_v59 = vsel %vm1229_vm4, %v1269_v20, 1.0  ;;  %v1328_v3 = vsel %vm1218_vm6, 1.5707964, %v1318_v4  ;;  %v3115_v23 = vsel %vm1069_vm7, 0.0, %v3788_v14  ;;  %v3124_v25 = vpop.eup %1883 }
 0x1d3   :  { %v3117_v9 = vadd.f32 %v651_v28, %v641_v56  ;;  %v1289_v60 = vsel %vm1219_vm10, %v3068_v32, %v1279_v59  ;;  %v1497_v58 = vsel %vm1477_vm2, %v1487_v31, %v1467_v38  ;;  %v1703_v20 = vadd.f32 -0.3333295, %v1388_v0 }
 0x1d4   :  { %1891 = vrcp.f32 %v1289_v60  ;;  %v3731_v10 = vand.u32 2147483647, %v3104_v6  ;;  %v1886_v4 = vpop.eup %1885  ;;  %v1137_v15 = vsub.f32 0.0, %v1117_v37  ;;  %v869_v28 = vsel %vm849_vm0, %v1654_v53, %v3041_v11 }
 0x1d5   :  { %3858 = vst [vmem:[#allocation27_spill] sm:$0xff] %v3117_v9  ;;  %1893 = vrsqrt.f32 %v3101_v52  ;;  %vm3133_vm6 = vcmp.eq.f32.partialorder %v1169_v13, 0.0  ;;  %v3137_v59 = vpop.eup %1887  ;;  %v1058_v39 = vadd.f32 %v1048_v17, %v948_v50  ;;  %v1408_v38 = vmul.f32 %v1703_v20, %v3050_v40 }
 0x1d6   :  { %3861 = vst [vmem:[#allocation28_spill] sm:$0xff] %v3137_v59  ;;  %v3142_v31 = vmul.f32 %v1882_v34, %v3731_v10  ;;  %v3732_v0 = vand.u32 2147483647, %v3122_v63  ;;  %v1517_v60 = vsub.f32 0.0, %v1497_v58  ;;  %v939_v53 = vsel %vm849_vm0, 0.7853982, %v3780_v22 }
 0x1d7   :  { %1895 = vrsqrt.f32 %v3117_v9  ;;  %v552_v13 = vmul.f32 %v3104_v6, %v3104_v6  ;;  %vm1098_vm3 = vcmp.lt.f32.partialorder %v2671_v51, 0.0  ;;  %v1418_v40 = vmul.f32 %v1408_v38, %v3031_v47 }
 0x1d8   :  { %v542_v17 = vmul.f32 %v2987_v41, %v2987_v41  ;;  %vm850_vm2 = vcmp.gt.f32.partialorder %v3142_v31, 0.41421357  ;;  %v3158_v50 = vmul.f32 %v1886_v4, %v3732_v0  ;;  %v1147_v34 = vsel %vm1127_vm13, %v1137_v15, %v1117_v37 }
 0x1d9   :  { %vm1478_vm0 = vcmp.lt.f32.partialorder %v2686_v49, 0.0  ;;  %v879_v20 = vsel %vm839_vm12, -1.0, %v869_v28  ;;  %v3168_v38 = vsel %vm3133_vm6, 0.0, %v3788_v14  ;;  %v890_v10 = vadd.f32 1.0, %v3142_v31 }
 0x1da   :  { %v1088_v4 = vsel %vm2699_vm15, %v3039_v29, %v1058_v39  ;;  %v1428_v0 = vadd.f32 %v1418_v40, %v3031_v47  ;;  %v3177_v36 = vsel %vm839_vm12, 1.5707964, %v939_v53  ;;  %v1684_v15 = vadd.f32 -1.0, %v3068_v32  ;;  %v1890_v37 = vpop.eup %1889  ;;  %v3207_v53 = vpop.f32.mrf.mxu0 }
 0x1db   :  { %v1527_v28 = vsel %vm1507_vm14, %v1517_v60, %v1497_v58  ;;  %v3182_v56 = vadd.f32 %v552_v13, %v542_v17  ;;  %vm840_vm13 = vcmp.gt.f32.partialorder %v3142_v31, 2.4142137  ;;  %v900_v5 = vsel %vm850_vm2, %v890_v10, 1.0 }
 0x1dc   :  { %v1438_v29 = vadd.f32 %v1428_v0, %v1328_v3  ;;  %v3187_v39 = vmul.f32 %v1890_v37, %v879_v20  ;;  %v910_v47 = vsel %vm840_vm13, %v3142_v31, %v900_v5  ;;  %vm1230_vm15 = vcmp.gt.f32.partialorder %v3158_v50, 0.41421357  ;;  %v3225_v20 = vpop.f32.mrf.mxu1 }
 0x1dd   :  { %3862 = vst [vmem:[#allocation29_spill] sm:$0xff] %v3182_v56  ;;  %v1108_v11 = vsub.f32 3.1415927, %v1088_v4  ;;  %v1319_v43 = vsel %vm1229_vm4, 0.7853982, %v3780_v22  ;;  %1897 = vrcp.f32 %v910_v47  ;;  %v1270_v58 = vadd.f32 1.0, %v3158_v50 }
 0x1de   :  { %v1537_v60 = vsub.f32 %v1147_v34, %v1527_v28  ;;  %v1468_v3 = vsel %vm2731_vm11, %v3084_v27, %v1438_v29  ;;  %v3202_v10 = vmul.f32 %v3187_v39, %v3187_v39  ;;  %v1249_v0 = vsel %vm1229_vm4, %v1684_v15, %v3068_v32 }
 0x1df   :  { %v1488_v13 = vsub.f32 3.1415927, %v1468_v3  ;;  %v642_v40 = vmul.f32 %v2995_v55, %v2995_v55  ;;  %vm1220_vm12 = vcmp.gt.f32.partialorder %v3158_v50, 2.4142137  ;;  %v1280_v42 = vsel %vm1230_vm15, %v1270_v58, 1.0 }
 0x1e0   :  { %vm1128_vm11 = vcmp.lt.f32.partialorder %v2779_v44, 0.0  ;;  %vm1508_vm7 = vcmp.lt.f32.partialorder %v2834_v2, 0.0  ;;  %v969_v27 = vmul.f32 0.080537446, %v3202_v10  ;;  %v3219_v17 = vsel %vm1219_vm10, 1.5707964, %v1319_v43 }
 0x1e1   :  { %1899 = vrsqrt.f32 %v3182_v56  ;;  %v1290_v34 = vsel %vm1220_vm12, %v3158_v50, %v1280_v42  ;;  %v1892_v15 = vpop.eup %1891  ;;  %v1118_v37 = vsel %vm1098_vm3, %v1108_v11, %v1088_v4  ;;  %v1259_v28 = vsel %vm1219_vm10, -1.0, %v1249_v0 }
 0x1e2   :  { %1901 = vrcp.f32 %v1290_v34  ;;  %v781_v5 = vand.u32 2147483647, %v3207_v53  ;;  %v3232_v29 = vpop.eup %1893  ;;  %v1547_v47 = vmul.f32 %v1537_v60, %v1537_v60  ;;  %v1498_v43 = vsel %vm1478_vm0, %v1488_v13, %v1468_v3 }
 0x1e3   :  { %3863 = vst [vmem:[#allocation30_spill] sm:$0xff] %v3232_v29  ;;  %v1664_v58 = vadd.f32 -0.13877685, %v969_v27  ;;  %v3236_v42 = vmul.f32 %v1892_v15, %v1259_v28  ;;  %v1655_v9 = vadd.f32 -1.0, %v3142_v31  ;;  %v652_v51 = vmul.f32 %v3122_v63, %v3122_v63 }
 0x1e4   :  { %vm3241_vm4 = vcmp.eq.f32.partialorder %v781_v5, 0.0  ;;  %v3864_v32 = vmov 0  ;;  %v1161_v4 = vand.u32 2147483647, %v3225_v20  ;;  %v3246_v11 = vpop.eup %1895  ;;  %v1138_v60 = vsub.f32 0.0, %v1118_v37 }
 0x1e5   :  { %v3865_v32 = vsel %vm3241_vm4, 4294967295, %v3864_v32  ;;  %3867 = vst [vmem:[#allocation32_spill] sm:$0xff] %v3246_v11  ;;  %v989_v49 = vmul.f32 %v1664_v58, %v3202_v10  ;;  %v3251_v3 = vmul.f32 %v3236_v42, %v3236_v42  ;;  %v811_v0 = vsel %vm3241_vm4, 1.0, %v781_v5 }
 0x1e6   :  { %3866 = vst [vmem:[#allocation31_spill] sm:$0xff] %v3865_v32  ;;  %v1518_v13 = vsub.f32 0.0, %v1498_v43  ;;  %v940_v27 = vsel %vm850_vm2, 0.7853982, %v3780_v22  ;;  %1903 = vrcp.f32 %v811_v0  ;;  %vm3258_vm14 = vcmp.eq.f32.partialorder %v1161_v4, 0.0 }
 0x1e7   :  { %v3868_v34 = vmov 0  ;;  %v999_v15 = vadd.f32 0.19977711, %v989_v49  ;;  %v1349_v28 = vmul.f32 0.080537446, %v3251_v3  ;;  %v1191_v32 = vsel %vm3258_vm14, 1.0, %v1161_v4  ;;  %v3276_v49 = vpop.f32.mrf.mxu0 }
 0x1e8   :  { %v3869_v34 = vsel %vm3258_vm14, 4294967295, %v3868_v34  ;;  %v3871_v58 = vand.u32 2147483647, %v3104_v6  ;;  %v3268_v5 = vadd.f32 %v3012_v46, %v1547_v47  ;;  %v870_v0 = vsel %vm850_vm2, %v1655_v9, %v3142_v31 }
 0x1e9   :  { %3870 = vst [vmem:[#allocation33_spill] sm:$0xff] %v3869_v34  ;;  %v3273_v11 = vadd.f32 %v652_v51, %v642_v40  ;;  %v1685_v59 = vadd.f32 -1.0, %v3158_v50  ;;  %v1009_v56 = vmul.f32 %v999_v15, %v3202_v10  ;;  %v1694_v29 = vadd.f32 -0.13877685, %v1349_v28 }
 0x1ea   :  { %vm1070_vm10 = vcmp.eq.f32.partialorder %v3871_v58, 0.0  ;;  %3872 = vst [vmem:[#allocation34_spill] sm:$0xff] %v3268_v5  ;;  %v1320_v4 = vsel %vm1230_vm15, 0.7853982, %v3780_v22  ;;  %1905 = vrcp.f32 %v1191_v32  ;;  %vm566_vm6 = vcmp.eq.f32.partialorder %v2117_v26, inf  ;;  %v1898_v51 = vpop.eup %1897 }
 0x1eb   :  { %3873 = vst [vmem:[#allocation35_spill] sm:$0xff] %v3273_v11  ;;  %v1148_v46 = vsel %vm1128_vm11, %v1138_v60, %v1118_v37  ;;  %v1528_v9 = vsel %vm1508_vm7, %v1518_v13, %v1498_v43  ;;  %v3289_v40 = vsel %vm840_vm13, 1.5707964, %v940_v27  ;;  %v3292_v47 = vsel %vm1070_vm10, 0.0, %v3788_v14  ;;  %v3299_v37 = vpop.f32.mrf.mxu1 }
 0x1ec   :  { %v1674_v15 = vadd.f32 -0.3333295, %v1009_v56  ;;  %v1369_v28 = vmul.f32 %v1694_v29, %v3251_v3  ;;  %v880_v32 = vsel %vm840_vm13, -1.0, %v870_v0  ;;  %v553_v44 = vmul.f32 %v3276_v49, %v3276_v49 }
 0x1ed   :  { %vm573_vm3 = vcmp.eq.f32.partialorder %v2170_v61, inf  ;;  %v3302_v2 = vmul.f32 %v1898_v51, %v880_v32  ;;  %1907 = vrsqrt.f32 %v3273_v11  ;;  %v1250_v56 = vsel %vm1230_vm15, %v1685_v59, %v3158_v50 }
 0x1ee   :  { %v3310_v29 = vsel %vm1220_vm12, 1.5707964, %v1320_v4  ;;  %v1538_v31 = vsub.f32 %v1148_v46, %v1528_v9  ;;  %v1029_v43 = vmul.f32 %v1674_v15, %v3202_v10  ;;  %v1379_v60 = vadd.f32 0.19977711, %v1369_v28  ;;  %v3315_v27 = vpop.eup %1899 }
 0x1ef   :  { %v543_v13 = vmul.f32 %v3207_v53, %v3207_v53  ;;  %v3319_v58 = vmul.f32 %v3302_v2, %v3302_v2  ;;  %v3874_v0 = vand.u32 2147483647, %v3122_v63  ;;  %v791_v59 = vand.u32 2147483647, %v3276_v49  ;;  %v1902_v46 = vpop.eup %1901 }
 0x1f0   :  { %v653_v4 = vmul.f32 %v3299_v37, %v3299_v37  ;;  %v1039_v10 = vmul.f32 %v1029_v43, %v3187_v39  ;;  %v1389_v9 = vmul.f32 %v1379_v60, %v3251_v3  ;;  %v1260_v51 = vsel %vm1220_vm12, -1.0, %v1250_v56 }
 0x1f1   :  { %vm1450_vm2 = vcmp.eq.f32.partialorder %v3874_v0, 0.0  ;;  %v3330_v15 = vadd.f32 %v553_v44, %v543_v13  ;;  %v970_v28 = vmul.f32 0.080537446, %v3319_v58  ;;  %v3333_v32 = vmul.f32 %v1902_v46, %v1260_v51 }
 0x1f2   :  { %v643_v0 = vmul.f32 %v3225_v20, %v3225_v20  ;;  %v1171_v5 = vand.u32 2147483647, %v3299_v37  ;;  %v3338_v34 = vmul.f32 %v1538_v31, %v1538_v31  ;;  %v1049_v43 = vadd.f32 %v1039_v10, %v3187_v39 }
 0x1f3   :  { %v1704_v11 = vadd.f32 -0.3333295, %v1389_v9  ;;  %v3342_v60 = vsel %vm1450_vm2, 0.0, %v3788_v14  ;;  %v1665_v50 = vadd.f32 -0.13877685, %v970_v28  ;;  %v3346_v44 = vmul.f32 %v3333_v32, %v3333_v32  ;;  %v1904_v13 = vpop.eup %1903 }
 0x1f4   :  { %vm1071_vm0 = vcmp.eq.f32.partialorder %v791_v59, 0.0  ;;  %v3348_v56 = vadd.f32 %v653_v4, %v643_v0  ;;  %v1059_v46 = vadd.f32 %v1049_v43, %v3177_v36  ;;  %1909 = vrsqrt.f32 %v3330_v15 }
 0x1f5   :  { %v1409_v31 = vmul.f32 %v1704_v11, %v3251_v3  ;;  %v567_v39 = vsel %vm566_vm6, %v2117_v26, %v2577_v35  ;;  %v990_v10 = vmul.f32 %v1665_v50, %v3319_v58  ;;  %v1350_v9 = vmul.f32 0.080537446, %v3346_v44 }
 0x1f6   :  { %v3359_v51 = vmul.f32 %v1904_v13, %v791_v59  ;;  %vm1451_vm13 = vcmp.eq.f32.partialorder %v1171_v5, 0.0  ;;  %vm1099_vm15 = vcmp.lt.f32.partialorder %v2854_v12, 0.0  ;;  %vm1479_vm12 = vcmp.lt.f32.partialorder %v2867_v48, 0.0 }
 0x1f7   :  { %v1419_v36 = vmul.f32 %v1409_v31, %v3236_v42  ;;  %v3365_v11 = vsel %vm1071_vm0, 0.0, %v3788_v14  ;;  %vm568_vm11 = vcmp.eq.f32.partialorder %v2117_v26, 0.0  ;;  %v574_v35 = vsel %vm573_vm3, %v2170_v61, %v2588_v24  ;;  %v1906_v3 = vpop.eup %1905 }
 0x1f8   :  { %v1089_v59 = vsel %vm2899_vm9, %v3115_v23, %v1059_v46  ;;  %v1000_v4 = vadd.f32 0.19977711, %v990_v10  ;;  %v1695_v28 = vadd.f32 -0.13877685, %v1350_v9  ;;  %1911 = vrsqrt.f32 %v3348_v56 }
 0x1f9   :  { %v1429_v0 = vadd.f32 %v1419_v36, %v3236_v42  ;;  %vm851_vm7 = vcmp.gt.f32.partialorder %v3359_v51, 0.41421357  ;;  %v3379_v43 = vsel %vm1451_vm13, 0.0, %v3788_v14  ;;  %v3875_v50 = vand.u32 2147483648, %v2117_v26 }
 0x1fa   :  { %v1010_v24 = vmul.f32 %v1000_v4, %v3319_v58  ;;  %v1370_v57 = vmul.f32 %v1695_v28, %v3346_v44  ;;  %v891_v23 = vadd.f32 1.0, %v3359_v51  ;;  %vm575_vm9 = vcmp.eq.f32.partialorder %v2170_v61, 0.0  ;;  %v3389_v46 = vpop.eup %1907 }
 0x1fb   :  { %v3383_v13 = vsel %vm568_vm11, %v3875_v50, %v567_v39  ;;  %v1109_v42 = vsub.f32 3.1415927, %v1089_v59  ;;  %v1439_v31 = vadd.f32 %v1429_v0, %v3219_v17  ;;  %vm841_vm10 = vcmp.gt.f32.partialorder %v3359_v51, 2.4142137 }
 0x1fc   :  { %v3393_v14 = vmul.f32 %v1906_v3, %v1171_v5  ;;  %v1675_v26 = vadd.f32 -0.3333295, %v1010_v24  ;;  %v1380_v39 = vadd.f32 0.19977711, %v1370_v57  ;;  %v901_v10 = vsel %vm851_vm7, %v891_v23, 1.0 }
 0x1fd   :  { %vm580_vm6 = vcmp.eq.f32.partialorder %v2392_v30, inf  ;;  %v1469_v9 = vsel %vm2914_vm1, %v3168_v38, %v1439_v31  ;;  %v911_v36 = vsel %vm841_vm10, %v3359_v51, %v901_v10  ;;  %v3876_v17 = vand.u32 2147483648, %v2170_v61 }
 0x1fe   :  { %v581_v5 = vsel %vm580_vm6, %v2392_v30, %v2662_v18  ;;  %vm1129_vm3 = vcmp.lt.f32.partialorder %v2958_v8, 0.0  ;;  %v1489_v3 = vsub.f32 3.1415927, %v1469_v9  ;;  %vm1509_vm2 = vcmp.lt.f32.partialorder %v2965_v33, 0.0  ;;  %v3877_v33 = vld [vmem:[#allocation16_spill] sm:$0xff] }
 0x1ff   :  { %v3406_v4 = vsel %vm575_vm9, %v3876_v17, %v574_v35  ;;  %v1030_v28 = vmul.f32 %v1675_v26, %v3319_v58  ;;  %v1390_v21 = vmul.f32 %v1380_v39, %v3346_v44  ;;  %1913 = vrcp.f32 %v911_v36 }
 0x200   :  { %vm1231_vm1 = vcmp.gt.f32.partialorder %v3393_v14, 0.41421357  ;;  %v1271_v38 = vadd.f32 1.0, %v3393_v14  ;;  %vm582_vm0 = vcmp.eq.f32.partialorder %v2392_v30, 0.0  ;;  %v586_v61 = vmul.f32 %v2757_v62, %v2633_v1 }
 0x201   :  { %v1119_v18 = vsel %vm1099_vm15, %v1109_v42, %v1089_v59  ;;  %v1499_v35 = vsel %vm1479_vm12, %v1489_v3, %v1469_v9  ;;  %v1040_v58 = vmul.f32 %v1030_v28, %v3302_v2  ;;  %v1705_v0 = vadd.f32 -0.3333295, %v1390_v21  ;;  %v3429_v23 = vpop.eup %1909 }
 0x202   :  { %v1656_v50 = vadd.f32 -1.0, %v3359_v51  ;;  %vm1221_vm13 = vcmp.gt.f32.partialorder %v3393_v14, 2.4142137  ;;  %v1281_v24 = vsel %vm1231_vm1, %v1271_v38, 1.0  ;;  %v583_v57 = vand.u32 2147483648, %v2392_v30 }
 0x203   :  { %v1050_v62 = vadd.f32 %v1040_v58, %v3302_v2  ;;  %v1410_v12 = vmul.f32 %v1705_v0, %v3346_v44  ;;  %v1291_v48 = vsel %vm1221_vm13, %v3393_v14, %v1281_v24  ;;  %vm587_vm15 = vcmp.eq.f32.partialorder %v2633_v1, inf }
 0x204   :  { %v1139_v59 = vsub.f32 0.0, %v1119_v18  ;;  %v1519_v42 = vsub.f32 0.0, %v1499_v35  ;;  %vm1100_vm12 = vcmp.lt.f32.partialorder %v2987_v41, 0.0  ;;  %v1686_v31 = vadd.f32 -1.0, %v3393_v14 }
 0x205   :  { %1915 = vrcp.f32 %v1291_v48  ;;  %v1060_v26 = vadd.f32 %v1050_v62, %v3289_v40  ;;  %v1420_v39 = vmul.f32 %v1410_v12, %v3333_v32  ;;  %v3443_v2 = vsel %vm582_vm0, %v583_v57, %v581_v5  ;;  %v3446_v10 = vpop.eup %1911  ;;  %v3880_v48 = vld [vmem:[#allocation30_spill] sm:$0xff] }
 0x206   :  { %v588_v44 = vsel %vm587_vm15, %v2633_v1, %v586_v61  ;;  %v871_v9 = vsel %vm851_vm7, %v1656_v50, %v3359_v51  ;;  %vm589_vm11 = vcmp.eq.f32.partialorder %v2633_v1, 0.0  ;;  %v590_v36 = vand.u32 2147483648, %v2633_v1 }
 0x207   :  { %v593_v40 = vmul.f32 %v2903_v7, %v2736_v54  ;;  %vm1480_vm9 = vcmp.lt.f32.partialorder %v2995_v55, 0.0  ;;  %v1090_v30 = vsel %vm3019_vm5, %v3292_v47, %v1060_v26  ;;  %v1430_v17 = vadd.f32 %v1420_v39, %v3333_v32  ;;  %v3882_v39 = vld [vmem:[#allocation29_spill] sm:$0xff] }
 0x208   :  { %v941_v5 = vsel %vm851_vm7, 0.7853982, %v3780_v22  ;;  %v1321_v3 = vsel %vm1231_vm1, 0.7853982, %v3780_v22  ;;  %v1149_v1 = vsel %vm1129_vm3, %v1139_v59, %v1119_v18  ;;  %v1529_v7 = vsel %vm1509_vm2, %v1519_v42, %v1499_v35  ;;  %v3881_v42 = vld [vmem:[#allocation15_spill] sm:$0xff] }
 0x209   :  { %v1251_v45 = vsel %vm1231_vm1, %v1686_v31, %v3393_v14  ;;  %v3473_v47 = vsel %vm589_vm11, %v590_v36, %v588_v44  ;;  %v1110_v32 = vsub.f32 3.1415927, %v1090_v30  ;;  %v1440_v28 = vadd.f32 %v1430_v17, %v3310_v29 }
 0x20a   :  { %v881_v21 = vsel %vm841_vm10, -1.0, %v871_v9  ;;  %vm594_vm5 = vcmp.eq.f32.partialorder %v2736_v54, inf  ;;  %v3481_v22 = vsel %vm841_vm10, 1.5707964, %v941_v5  ;;  %v3485_v8 = vsel %vm1221_vm13, 1.5707964, %v1321_v3 }
 0x20b   :  { %v600_v38 = vmul.f32 %v3877_v33, %v2844_v16  ;;  %v607_v61 = vmul.f32 %v3124_v25, %v2993_v19  ;;  %v1539_v29 = vsub.f32 %v1149_v1, %v1529_v7  ;;  %vm1130_vm7 = vcmp.lt.f32.partialorder %v3104_v6, 0.0  ;;  %v3879_v25 = vld [vmem:[#allocation13_spill] sm:$0xff] }
 0x20c   :  { %v1470_v35 = vsel %vm3026_vm8, %v3342_v60, %v1440_v28  ;;  %v1261_v51 = vsel %vm1221_vm13, -1.0, %v1251_v45  ;;  %v595_v58 = vsel %vm594_vm5, %v2736_v54, %v593_v40  ;;  %v1914_v0 = vpop.eup %1913  ;;  %vm596_vm10 = vcmp.eq.f32.partialorder %v2736_v54, 0.0 }
 0x20d   :  { %v1490_v50 = vsub.f32 3.1415927, %v1470_v35  ;;  %v597_v24 = vand.u32 2147483648, %v2736_v54  ;;  %vm601_vm6 = vcmp.eq.f32.partialorder %v2844_v16, inf  ;;  %vm666_vm3 = vcmp.eq.f32.partialorder %v3879_v25, inf }
 0x20e   :  { %v1120_v57 = vsel %vm1100_vm12, %v1110_v32, %v1090_v30  ;;  %v3504_v62 = vmul.f32 %v1914_v0, %v881_v21  ;;  %vm603_vm8 = vcmp.eq.f32.partialorder %v2844_v16, 0.0  ;;  %vm608_vm2 = vcmp.eq.f32.partialorder %v2993_v19, inf }
 0x20f   :  { %vm1510_vm1 = vcmp.lt.f32.partialorder %v3122_v63, 0.0  ;;  %v602_v60 = vsel %vm601_vm6, %v2844_v16, %v600_v38  ;;  %v604_v14 = vand.u32 2147483648, %v2844_v16  ;;  %v609_v12 = vsel %vm608_vm2, %v2993_v19, %v607_v61  ;;  %v3883_v61 = vld [vmem:[#allocation12_spill] sm:$0xff] }
 0x210   :  { %v614_v59 = vmul.f32 %v3880_v48, %v3101_v52  ;;  %vm673_vm0 = vcmp.eq.f32.partialorder %v3881_v42, inf  ;;  %v3515_v41 = vmul.f32 %v1539_v29, %v1539_v29  ;;  %v961_v31 = vmul.f32 %v3504_v62, %v3504_v62  ;;  %v3889_v48 = vld [vmem:[#allocation23_spill] sm:$0xff] }
 0x211   :  { %v611_v26 = vand.u32 2147483648, %v2993_v19  ;;  %v621_v44 = vmul.f32 %v3315_v27, %v3882_v39  ;;  %v1140_v9 = vsub.f32 0.0, %v1120_v57  ;;  %v1500_v36 = vsel %vm1480_vm9, %v1490_v50, %v1470_v35  ;;  %v3885_v50 = vld [vmem:[#allocation25_spill] sm:$0xff] }
 0x212   :  { %v3526_v40 = vsel %vm596_vm10, %v597_v24, %v595_v58  ;;  %vm610_vm13 = vcmp.eq.f32.partialorder %v2993_v19, 0.0  ;;  %v1916_v30 = vpop.eup %1915  ;;  %v971_v17 = vmul.f32 0.080537446, %v961_v31  ;;  %v3531_v5 = vsel %vm603_vm8, %v604_v14, %v602_v60  ;;  %v3884_v58 = vld [vmem:[#allocation18_spill] sm:$0xff]  ;;  %v3886_v24 = vld [vmem:[#allocation20_spill] sm:$0xff] }
 0x213   :  { %v3533_v3 = vsel %vm610_vm13, %v611_v26, %v609_v12  ;;  %vm615_vm15 = vcmp.eq.f32.partialorder %v3101_v52, inf  ;;  %v3536_v27 = vmul.f32 %v1916_v30, %v1261_v51  ;;  %v618_v54 = vand.u32 2147483648, %v3101_v52 }
 0x214   :  { %v616_v55 = vsel %vm615_vm15, %v3101_v52, %v614_v59  ;;  %vm622_vm12 = vcmp.eq.f32.partialorder %v3882_v39, inf  ;;  %v1520_v1 = vsub.f32 0.0, %v1500_v36  ;;  %v1666_v19 = vadd.f32 -0.13877685, %v971_v17 }
 0x215   :  { %v623_v7 = vsel %vm622_vm12, %v3882_v39, %v621_v44  ;;  %v628_v16 = vmul.f32 %v3429_v23, %v3330_v15  ;;  %v3546_v45 = vsel %vm1130_vm7, %v1140_v9, %v1120_v57  ;;  %v1341_v32 = vmul.f32 %v3536_v27, %v3536_v27  ;;  %v3887_v57 = vld [vmem:[#allocation14_spill] sm:$0xff]  ;;  %v3890_v44 = vld [vmem:[#allocation19_spill] sm:$0xff]  ;;  %v3891_v9 = vld [vmem:[#allocation24_spill] sm:$0xff] }
 0x216   :  { %vm617_vm11 = vcmp.eq.f32.partialorder %v3101_v52, 0.0  ;;  %v625_v28 = vand.u32 2147483648, %v3882_v39  ;;  %v991_v21 = vmul.f32 %v1666_v19, %v961_v31  ;;  %vm624_vm9 = vcmp.eq.f32.partialorder %v3882_v39, 0.0 }
 0x217   :  { %v3552_v33 = vsel %vm617_vm11, %v618_v54, %v616_v55  ;;  %vm629_vm5 = vcmp.eq.f32.partialorder %v3330_v15, inf  ;;  %v1351_v38 = vmul.f32 0.080537446, %v1341_v32  ;;  %v632_v6 = vand.u32 2147483648, %v3330_v15  ;;  %v3894_v54 = vld [vmem:[#allocation26_spill] sm:$0xff] }
 0x218   :  { %v3556_v23 = vsel %vm624_vm9, %v625_v28, %v623_v7  ;;  %v667_v29 = vsel %vm666_vm3, %v3879_v25, %v3883_v61  ;;  %v3565_v52 = vsel %vm1510_vm1, %v1520_v1, %v1500_v36  ;;  %v1001_v18 = vadd.f32 0.19977711, %v991_v21  ;;  %v3896_v61 = vld [vmem:[#allocation28_spill] sm:$0xff] }
 0x219   :  { %v3568_v35 = vsel %vm629_vm5, %v3330_v15, %v628_v16  ;;  %vm668_vm7 = vcmp.eq.f32.partialorder %v3879_v25, 0.0  ;;  %v1696_v51 = vadd.f32 -0.13877685, %v1351_v38  ;;  %v674_v0 = vsel %vm673_vm0, %v3881_v42, %v3884_v58  ;;  %v3895_v38 = vld [vmem:[#allocation22_spill] sm:$0xff] }
 0x21a   :  { %vm680_vm10 = vcmp.eq.f32.partialorder %v3885_v50, inf  ;;  %v686_v60 = vmul.f32 %v3887_v57, %v3886_v24  ;;  %v1011_v63 = vmul.f32 %v1001_v18, %v961_v31  ;;  %v3888_v14 = vand.u32 2147483648, %v3879_v25  ;;  %v3893_v25 = vld [vmem:[#allocation17_spill] sm:$0xff] }
 0x21b   :  { %vm675_vm6 = vcmp.eq.f32.partialorder %v3881_v42, 0.0  ;;  %v681_v59 = vsel %vm680_vm10, %v3885_v50, %v3889_v48  ;;  %v1371_v26 = vmul.f32 %v1696_v51, %v1341_v32  ;;  %vm682_vm3 = vcmp.eq.f32.partialorder %v3885_v50, 0.0  ;;  %v3898_v48 = vld [vmem:[#allocation32_spill] sm:$0xff] }
 0x21c   :  { %v670_v12 = vsel %vm668_vm7, %v3888_v14, %v667_v29  ;;  %v683_v39 = vand.u32 2147483648, %v3885_v50  ;;  %v693_v36 = vmul.f32 %v3891_v9, %v3890_v44  ;;  %v1676_v30 = vadd.f32 -0.3333295, %v1011_v63  ;;  %v3897_v14 = vld [vmem:[#allocation27_spill] sm:$0xff] }
 0x21d   :  { %v3892_v17 = vand.u32 2147483648, %v3881_v42  ;;  %vm687_vm8 = vcmp.eq.f32.partialorder %v3886_v24, inf  ;;  %v700_v1 = vmul.f32 %v3894_v54, %v3893_v25  ;;  %v1381_v19 = vadd.f32 0.19977711, %v1371_v26 }
 0x21e   :  { %v684_v7 = vsel %vm682_vm3, %v683_v39, %v681_v59  ;;  %v688_v16 = vsel %vm687_vm8, %v3886_v24, %v686_v60  ;;  %vm689_vm2 = vcmp.eq.f32.partialorder %v3886_v24, 0.0  ;;  %v1031_v28 = vmul.f32 %v1676_v30, %v961_v31 }
 0x21f   :  { %v677_v55 = vsel %vm675_vm6, %v3892_v17, %v674_v0  ;;  %v690_v21 = vand.u32 2147483648, %v3886_v24  ;;  %vm694_vm1 = vcmp.eq.f32.partialorder %v3890_v44, inf  ;;  %v707_v42 = vmul.f32 %v3896_v61, %v3895_v38 }
 0x220   :  { %v1391_v29 = vmul.f32 %v1381_v19, %v1341_v32  ;;  %v695_v18 = vsel %vm694_vm1, %v3890_v44, %v693_v36  ;;  %vm696_vm0 = vcmp.eq.f32.partialorder %v3890_v44, 0.0  ;;  %vm701_vm13 = vcmp.eq.f32.partialorder %v3893_v25, inf }
 0x221   :  { %vm1101_vm15 = vcmp.lt.f32.partialorder %v3207_v53, 0.0  ;;  %v1041_v51 = vmul.f32 %v1031_v28, %v3504_v62  ;;  %v691_v58 = vsel %vm689_vm2, %v690_v21, %v688_v16  ;;  %v697_v31 = vand.u32 2147483648, %v3890_v44 }
 0x222   :  { %v702_v0 = vsel %vm701_vm13, %v3893_v25, %v700_v1  ;;  %v1706_v50 = vadd.f32 -0.3333295, %v1391_v29  ;;  %vm703_vm12 = vcmp.eq.f32.partialorder %v3893_v25, 0.0  ;;  %v704_v24 = vand.u32 2147483648, %v3893_v25 }
 0x223   :  { %vm708_vm11 = vcmp.eq.f32.partialorder %v3895_v38, inf  ;;  %v1051_v57 = vadd.f32 %v1041_v51, %v3504_v62  ;;  %v698_v60 = vsel %vm696_vm0, %v697_v31, %v695_v18  ;;  %v714_v59 = vmul.f32 %v3898_v48, %v3897_v14 }
 0x224   :  { %v709_v63 = vsel %vm708_vm11, %v3895_v38, %v707_v42  ;;  %v1411_v26 = vmul.f32 %v1706_v50, %v1341_v32  ;;  %v705_v39 = vsel %vm703_vm12, %v704_v24, %v702_v0  ;;  %vm710_vm9 = vcmp.eq.f32.partialorder %v3895_v38, 0.0 }
 0x225   :  { %v711_v44 = vand.u32 2147483648, %v3895_v38  ;;  %v1061_v9 = vadd.f32 %v1051_v57, %v3481_v22  ;;  %vm715_vm5 = vcmp.eq.f32.partialorder %v3897_v14, inf  ;;  %vm717_vm7 = vcmp.eq.f32.partialorder %v3897_v14, 0.0 }
 0x226   :  { %v735_v62 = vsub.f32 %v3406_v4, %v677_v55  ;;  %vm1481_vm10 = vcmp.lt.f32.partialorder %v3225_v20, 0.0  ;;  %v1421_v36 = vmul.f32 %v1411_v26, %v3536_v27  ;;  %v734_v32 = vsub.f32 %v3383_v13, %v670_v12  ;;  %v3900_v4 = vld [vmem:[#allocation35_spill] sm:$0xff] }
 0x227   :  { %v712_v30 = vsel %vm710_vm9, %v711_v44, %v709_v63  ;;  %v736_v17 = vsub.f32 %v3443_v2, %v684_v7  ;;  %v1091_v54 = vsel %vm3241_vm4, %v3365_v11, %v1061_v9  ;;  %vm1131_vm6 = vcmp.lt.f32.partialorder %v3276_v49, 0.0 }
 0x228   :  { %v716_v22 = vsel %vm715_vm5, %v3897_v14, %v714_v59  ;;  %v718_v1 = vand.u32 2147483648, %v3897_v14  ;;  %v721_v55 = vmul.f32 %v3389_v46, %v3900_v4  ;;  %v1111_v19 = vsub.f32 3.1415927, %v1091_v54  ;;  %v3902_v14 = vld [vmem:[#allocation34_spill] sm:$0xff] }
 0x229   :  { %v1431_v16 = vadd.f32 %v1421_v36, %v3536_v27  ;;  %vm631_vm3 = vcmp.eq.f32.partialorder %v3330_v15, 0.0  ;;  %vm722_vm8 = vcmp.eq.f32.partialorder %v3900_v4, inf  ;;  %v737_v13 = vsub.f32 %v3473_v47, %v691_v58 }
 0x22a   :  { %vm1511_vm4 = vcmp.lt.f32.partialorder %v3299_v37, 0.0  ;;  %vm724_vm2 = vcmp.eq.f32.partialorder %v3900_v4, 0.0  ;;  %v728_v11 = vmul.f32 %v3446_v10, %v3348_v56  ;;  %v738_v2 = vsub.f32 %v3526_v40, %v698_v60 }
 0x22b   :  { %v745_v12 = vmul.f32 %v735_v62, %v735_v62  ;;  %v1121_v46 = vsel %vm1101_vm15, %v1111_v19, %v1091_v54  ;;  %v1441_v27 = vadd.f32 %v1431_v16, %v3485_v8  ;;  %v744_v7 = vmul.f32 %v734_v32, %v734_v32 }
 0x22c   :  { %v746_v28 = vmul.f32 %v736_v17, %v736_v17  ;;  %v719_v47 = vsel %vm717_vm7, %v718_v1, %v716_v22  ;;  %v723_v21 = vsel %vm722_vm8, %v3900_v4, %v721_v55  ;;  %v725_v38 = vand.u32 2147483648, %v3900_v4 }
 0x22d   :  { %v739_v61 = vsub.f32 %v3531_v5, %v705_v39  ;;  %v1141_v10 = vsub.f32 0.0, %v1121_v46  ;;  %v1471_v42 = vsel %vm3258_vm14, %v3379_v43, %v1441_v27  ;;  %v747_v53 = vmul.f32 %v737_v13, %v737_v13 }
 0x22e   :  { %v754_v29 = vadd.f32 %v745_v12, %v744_v7  ;;  %v1491_v18 = vsub.f32 3.1415927, %v1471_v42  ;;  %vm729_vm1 = vcmp.eq.f32.partialorder %v3348_v56, inf  ;;  %vm731_vm0 = vcmp.eq.f32.partialorder %v3348_v56, 0.0 }
 0x22f   :  { %v1540_v8 = vsub.f32 %v3546_v45, %v3565_v52  ;;  %v730_v51 = vsel %vm729_vm1, %v3348_v56, %v728_v11  ;;  %v740_v58 = vsub.f32 %v3533_v3, %v712_v30  ;;  %v748_v5 = vmul.f32 %v738_v2, %v738_v2 }
 0x230   :  { %v755_v31 = vadd.f32 %v754_v29, %v746_v28  ;;  %v1501_v0 = vsel %vm1481_vm10, %v1491_v18, %v1471_v42  ;;  %v726_v43 = vsel %vm724_vm2, %v725_v38, %v723_v21  ;;  %v732_v50 = vand.u32 2147483648, %v3348_v56 }
 0x231   :  { %v741_v24 = vsub.f32 %v3552_v33, %v719_v47  ;;  %v1151_v57 = vsel %vm1131_vm6, %v1141_v10, %v1121_v46  ;;  %v1521_v45 = vsub.f32 0.0, %v1501_v0  ;;  %v749_v52 = vmul.f32 %v739_v61, %v739_v61 }
 0x232   :  { %v756_v60 = vadd.f32 %v755_v31, %v747_v53  ;;  %v633_v20 = vsel %vm631_vm3, %v632_v6, %v3568_v35  ;;  %v733_v3 = vsel %vm731_vm0, %v732_v50, %v730_v51  ;;  %v1550_v63 = vmul.f32 %v1540_v8, %v1540_v8 }
 0x233   :  { %v1557_v48 = vadd.f32 %v3902_v14, %v3338_v34  ;;  %v1531_v56 = vsel %vm1511_vm4, %v1521_v45, %v1501_v0  ;;  %v742_v49 = vsub.f32 %v3556_v23, %v726_v43  ;;  %v750_v33 = vmul.f32 %v740_v58, %v740_v58 }
 0x234   :  { %v757_v59 = vadd.f32 %v756_v60, %v748_v5  ;;  %v1541_v26 = vsub.f32 %v1151_v57, %v1531_v56  ;;  %v743_v44 = vsub.f32 %v633_v20, %v733_v3  ;;  %v751_v9 = vmul.f32 %v741_v24, %v741_v24 }
 0x235   :  { %v1558_v39 = vadd.f32 %v1557_v48, %v3515_v41  ;;  %v752_v35 = vmul.f32 %v742_v49, %v742_v49  ;;  %v1570_v46 = vlaneseq }
 0x236   :  { %v758_v62 = vadd.f32 %v757_v59, %v749_v52  ;;  %v1551_v15 = vmul.f32 %v1541_v26, %v1541_v26  ;;  %v753_v32 = vmul.f32 %v743_v44, %v743_v44 }
 0x237   :  { %v1559_v6 = vadd.f32 %v1558_v39, %v1550_v63  ;;  %v1571_v27 = vand.u32 127, %v1570_v46 }
 0x238   :  { %v759_v36 = vadd.f32 %v758_v62, %v750_v33 }
 0x239   :  { %v1560_v30 = vadd.f32 %v1559_v6, %v1551_v15  ;;  %vm1573_vm14 = vcmp.eq.s32.totalorder %v1571_v27, 1  ;;  %vm1572_vm13 = vcmp.eq.s32.totalorder %v1571_v27, 0 }
 0x23a   :  { %v760_v34 = vadd.f32 %v759_v36, %v751_v9 }
 0x23c   :  { %v761_v17 = vadd.f32 %v760_v34, %v752_v35 }
 0x23e   :  { %v762_v37 = vadd.f32 %v761_v17, %v753_v32 }
 0x240   :  { %763 = vadd.xlane.f32.xlu0 %v762_v37 }
 0x244   :  { %1561 = vadd.xlane.f32.xlu0 %v1560_v30 }
 0x2c9   :  { %v764_v23 = vpop.xlane.xlu0 %763 }
 0x2ca   :  { %v765_v25 = vrot.slane %v764_v23, 4 }
 0x2cc   :  { %v766_v54 = vadd.f32 %v765_v25, %v764_v23 }
 0x2cd   :  { %v1562_v22 = vpop.xlane.xlu0 %1561 }
 0x2ce   :  { %v767_v1 = vrot.slane %v766_v54, 2  ;;  %v1563_v41 = vrot.slane %v1562_v22, 4 }
 0x2d0   :  { %v768_v4 = vadd.f32 %v767_v1, %v766_v54  ;;  %v1564_v55 = vadd.f32 %v1563_v41, %v1562_v22 }
 0x2d2   :  { %v769_v19 = vrot.slane %v768_v4, 1  ;;  %v1565_v16 = vrot.slane %v1564_v55, 2 }
 0x2d4   :  { %v770_v13 = vadd.f32 %v769_v19, %v768_v4  ;;  %v1566_v11 = vadd.f32 %v1565_v16, %v1564_v55 }
 0x2d6   :  { %1707 = vpush %v770_v13  ;;  %v1567_v2 = vrot.slane %v1566_v11, 1 }
 0x2d8   :  { %v1568_v12 = vadd.f32 %v1567_v2, %v1566_v11 }
 0x2da   :  { %1709 = vpush %v1568_v12 }
 0x307   :  { %s1708_s0 = spop %1707 }
 0x308   :  { %v1576_v28 = vstv %s1708_s0 }
 0x30b   :  { %s1710_s29 = spop %1709 }
 0x30c   :  { %v1574_v7 = vstv %s1710_s29 }
 0x30d   :  { %v1575_v47 = vsel %vm1573_vm14, %v1574_v7, 0.0 }
 0x30e   :  { %v1577_v21 = vsel %vm1572_vm13, %v1576_v28, %v1575_v47 }
 0x30f   :  { %1578 = vst [vmem:[#allocation8] sm:$0xff] %v1577_v21 }
 0x310   :  { %1988 = shalt.err (!%p1985_p5)
}
 0x311   :  { %1588 = dma.vmem_to_hbm [thread:$0]  %s1586_s28, 128, %s3681_s3, [#allocation4]  }
 0x312   :  { %2001 = dma.done.wait [#allocation4], 128  }
 0x313   :  { %2002 = vsyncadd [#allocation4], 4294967168 }
 0x314   :  { %1592 = vsyncpa [#allocation3], 1 }
 0x315   :  { %1593 = vsyncpa [#allocation6], 1 }
 0x316   :  { %1594 = vsyncpa [#allocation4], 1 }

</bundles_post_ra>
